<compile_context>
chip_gen: v6e
topology: v6e:2x2x1
jax: 0.10.0
libtpu: 0.0.40
codegen_flags: <defaults>
</compile_context>

<pallas_src>
import math
import jax
import jax.numpy as jnp
from jax.experimental import pallas as pl
from jax.experimental.pallas import tpu as pltpu

# ---- small DistilBERT-style config ----
VOCAB = 100
MAX_POS = 32
D = 128               # hidden dim
N_HEADS = 4
HEAD_DIM = D // N_HEADS
FFN_DIM = 256
N_LAYERS = 2
NUM_CLASSES = 3
LN_EPS = 1e-12
HEAD_PAD = 128        # lane-dense padded classifier output width
B = 2
S = 8


def _layernorm(x, g, b):
    mu = jnp.mean(x, axis=-1, keepdims=True)
    var = jnp.mean(jnp.square(x - mu), axis=-1, keepdims=True)
    return (x - mu) * jax.lax.rsqrt(var + LN_EPS) * g + b


def _mm(a, w_bf16):
    # bf16 operands, f32 accumulation on the MXU
    return jnp.dot(a.astype(jnp.bfloat16), w_bf16, preferred_element_type=jnp.float32)


# ---------------- fused kernel: grid = (N_LAYERS,) ----------------
def fused_kernel(emb_ref, bias_ref, hm_ref, seg_ref, eg_ref, eb_ref,
                 wqkv_ref, bqkv_ref, wo_ref, bo_ref, ln1g_ref, ln1b_ref,
                 w1_ref, b1_ref, w2_ref, b2_ref, ln2g_ref, ln2b_ref,
                 wp_ref, bp_ref, wc_ref, bc_ref,
                 o_ref, h_ref):
    l = pl.program_id(0)
    bsz, hs = bias_ref.shape          # [B, N_HEADS*S]
    seq = hs // N_HEADS

    # ---- iteration 0: embedding LayerNorm into the resident hidden state ----
    @pl.when(l == 0)
    def _():
        h_ref[...] = _layernorm(emb_ref[...], eg_ref[...], eb_ref[...])

    x = h_ref[...]                                            # [B*S, D] f32

    # ---- fused QKV projection (scale already folded into Wq) ----
    qkv = _mm(x, wqkv_ref[...]) + bqkv_ref[...]               # [B*S, 3D]
    q = qkv[:, 0:D]
    k = qkv[:, D:2 * D]
    v = qkv[:, 2 * D:3 * D]

    hm = hm_ref[...]                                          # [H*S, D] block-diag head mask
    seg = seg_ref[...]                                        # [H*S, H*S] per-head segment sums

    # ---- attention: all heads in one scores matmul + one context matmul per batch ----
    ctx_parts = []
    for bi in range(bsz):                                     # tiny static loop (B=2)
        r0 = bi * seq
        qb = q[r0:r0 + seq, :]                                # [S, D]
        kb = k[r0:r0 + seq, :]
        vb = v[r0:r0 + seq, :]
        k_exp = jnp.concatenate([kb] * N_HEADS, axis=0) * hm  # [H*S, D] block-diagonal K
        v_exp = jnp.concatenate([vb] * N_HEADS, axis=0) * hm  # [H*S, D] block-diagonal V
        # scores[i, h*S+j] = sum_{d in head h} q[i,d] * k[j,d]
        s = jax.lax.dot_general(qb, k_exp, (((1,), (1,)), ((), ())),
                                preferred_element_type=jnp.float32)   # [S, H*S]
        s = s + bias_ref[bi:bi + 1, :]                        # key-padding additive bias
        s = s - jnp.max(s, axis=-1, keepdims=True)            # row max (exact softmax shift)
        e = jnp.exp(s)
        denom = jnp.dot(e, seg, preferred_element_type=jnp.float32)   # per-head sums, bcast
        p = e * pl.reciprocal(denom, approx=True)
        ctx_parts.append(jnp.dot(p, v_exp, preferred_element_type=jnp.float32))  # [S, D]
    ctx = jnp.concatenate(ctx_parts, axis=0)                  # [B*S, D] lane-dense

    attn = _mm(ctx, wo_ref[...]) + bo_ref[...]
    h1 = _layernorm(x + attn, ln1g_ref[...], ln1b_ref[...])

    # ---- FFN ----
    f = _mm(h1, w1_ref[...]) + b1_ref[...]
    # TODO(synk): HF DistilBERT uses exact (erf) GELU; tanh approximation used here
    f = jax.nn.gelu(f, approximate=True)
    f = _mm(f, w2_ref[...]) + b2_ref[...]
    h2 = _layernorm(h1 + f, ln2g_ref[...], ln2b_ref[...])

    h_ref[...] = h2                                           # carry to next layer

    # ---- last iteration: classification head (computed on all tokens, lane-dense out) ----
    @pl.when(l == pl.num_programs(0) - 1)
    def _():
        z = jnp.maximum(_mm(h2, wp_ref[...]) + bp_ref[...], 0.0)   # pre_classifier + ReLU
        # dropout: eval mode -> identity
        o_ref[...] = _mm(z, wc_ref[...]) + bc_ref[...]             # [B*S, 128] (padded)


# ---------------- wrapper ----------------
def _call_fused(emb, att_bias, headmask, seg_ones, params):
    tok = emb.shape[0]
    n_layers = params['wqkv'].shape[0]

    def c(shape):
        return pl.BlockSpec(shape, lambda l: (0,) * len(shape))

    def per_layer(shape):
        n = len(shape)
        return pl.BlockSpec((None,) + shape, lambda l: (l,) + (0,) * n)

    in_specs = [
        c((tok, D)), c(att_bias.shape), c(headmask.shape), c(seg_ones.shape),
        c((1, D)), c((1, D)),                          # emb LN g, b
        per_layer((D, 3 * D)), per_layer((1, 3 * D)),  # wqkv, bqkv
        per_layer((D, D)), per_layer((1, D)),          # wo, bo
        per_layer((1, D)), per_layer((1, D)),          # ln1 g, b
        per_layer((D, FFN_DIM)), per_layer((1, FFN_DIM)),  # w1, b1
        per_layer((FFN_DIM, D)), per_layer((1, D)),        # w2, b2
        per_layer((1, D)), per_layer((1, D)),          # ln2 g, b
        c((D, D)), c((1, D)),                          # wp, bp
        c((D, HEAD_PAD)), c((1, HEAD_PAD)),            # wc (padded), bc (padded)
    ]
    return pl.pallas_call(
        fused_kernel,
        grid=(n_layers,),
        out_shape=jax.ShapeDtypeStruct((tok, HEAD_PAD), jnp.float32),
        in_specs=in_specs,
        out_specs=c((tok, HEAD_PAD)),
        scratch_shapes=[pltpu.VMEM((tok, D), jnp.float32)],
        compiler_params=pltpu.CompilerParams(dimension_semantics=("arbitrary",)),
    )(emb, att_bias, headmask, seg_ones,
      params['emb_ln_g'], params['emb_ln_b'],
      params['wqkv'], params['bqkv'], params['wo'], params['bo'],
      params['ln1_g'], params['ln1_b'],
      params['w1'], params['b1'], params['w2'], params['b2'],
      params['ln2_g'], params['ln2_b'],
      params['wp'], params['bp'], params['wc_pad'], params['bc_pad'])


def distilbert_forward(params, input_ids, attention_mask):
    b_, s_ = input_ids.shape
    # embeddings (gather is glue)
    we = params['word_emb'][input_ids]                   # [B, S, D]
    pe = params['pos_emb'][:s_][None, :, :]              # [1, S, D]
    emb = (we + pe).reshape(b_ * s_, D).astype(jnp.float32)

    # key-padding additive bias, pre-tiled over heads: [B, H*S]
    bias = jnp.where(attention_mask.astype(jnp.float32) == 0.0, -1e9, 0.0).astype(jnp.float32)
    att_bias = jnp.tile(bias, (1, N_HEADS))

    # block-diagonal head mask [H*S, D] and per-head segment-sum matrix [H*S, H*S]
    hs = N_HEADS * s_
    lane_head = jnp.arange(D) // HEAD_DIM
    row_head = jnp.arange(hs) // s_
    headmask = (row_head[:, None] == lane_head[None, :]).astype(jnp.float32)
    seg_ones = (row_head[:, None] == row_head[None, :]).astype(jnp.float32)

    out = _call_fused(emb, att_bias, headmask, seg_ones, params)    # [B*S, 128]
    logits = out.reshape(b_, s_, HEAD_PAD)[:, 0, :NUM_CLASSES]      # CLS pooling + unpad (glue)
    return logits


def init_params(key):
    keys = iter(jax.random.split(key, 32))

    def dense(kk, fan_in, fan_out):
        return jax.random.normal(kk, (fan_in, fan_out), jnp.float32) * 0.02

    params = {
        'word_emb': jax.random.normal(next(keys), (VOCAB, D), jnp.float32) * 0.02,
        'pos_emb': jax.random.normal(next(keys), (MAX_POS, D), jnp.float32) * 0.02,
        'emb_ln_g': jnp.ones((1, D), jnp.float32),
        'emb_ln_b': jnp.zeros((1, D), jnp.float32),
    }

    scale = 1.0 / math.sqrt(HEAD_DIM)
    wqkv, bqkv, wo, bo, ln1g, ln1b, w1, b1, w2, b2, ln2g, ln2b = ([] for _ in range(12))
    for _ in range(N_LAYERS):
        wq = dense(next(keys), D, D) * scale       # fold 1/sqrt(head_dim) into Wq (bq=0, so no bias scaling needed)
        wk = dense(next(keys), D, D)
        wv = dense(next(keys), D, D)
        wqkv.append(jnp.concatenate([wq, wk, wv], axis=1))
        bqkv.append(jnp.zeros((1, 3 * D), jnp.float32))
        wo.append(dense(next(keys), D, D))
        bo.append(jnp.zeros((1, D), jnp.float32))
        ln1g.append(jnp.ones((1, D), jnp.float32))
        ln1b.append(jnp.zeros((1, D), jnp.float32))
        w1.append(dense(next(keys), D, FFN_DIM))
        b1.append(jnp.zeros((1, FFN_DIM), jnp.float32))
        w2.append(dense(next(keys), FFN_DIM, D))
        b2.append(jnp.zeros((1, D), jnp.float32))
        ln2g.append(jnp.ones((1, D), jnp.float32))
        ln2b.append(jnp.zeros((1, D), jnp.float32))

    params.update({
        'wqkv': jnp.stack(wqkv).astype(jnp.bfloat16), 'bqkv': jnp.stack(bqkv),
        'wo': jnp.stack(wo).astype(jnp.bfloat16), 'bo': jnp.stack(bo),
        'ln1_g': jnp.stack(ln1g), 'ln1_b': jnp.stack(ln1b),
        'w1': jnp.stack(w1).astype(jnp.bfloat16), 'b1': jnp.stack(b1),
        'w2': jnp.stack(w2).astype(jnp.bfloat16), 'b2': jnp.stack(b2),
        'ln2_g': jnp.stack(ln2g), 'ln2_b': jnp.stack(ln2b),
        'wp': dense(next(keys), D, D).astype(jnp.bfloat16),
        'bp': jnp.zeros((1, D), jnp.float32),
        'wc_pad': jnp.pad(dense(next(keys), D, NUM_CLASSES),
                          ((0, 0), (0, HEAD_PAD - NUM_CLASSES))).astype(jnp.bfloat16),
        'bc_pad': jnp.zeros((1, HEAD_PAD), jnp.float32),
    })
    return params


if __name__ == "__main__":
    key = jax.random.PRNGKey(0)
    k_param, k_ids = jax.random.split(key)
    params = init_params(k_param)

    input_ids = jax.random.randint(k_ids, (B, S), 0, VOCAB, dtype=jnp.int32)
    attention_mask = jnp.array([[1, 1, 1, 1, 1, 1, 1, 1],
                                [1, 1, 1, 1, 1, 1, 0, 0]], dtype=jnp.int32)

    logits = distilbert_forward(params, input_ids, attention_mask)
    logits = jax.block_until_ready(logits)
    assert logits.shape == (B, NUM_CLASSES)
    assert bool(jnp.all(jnp.isfinite(logits)))
    print("KERNEL_OK")
</pallas_src>

<mosaic_0001>
module attributes {stable_mosaic.version = 11 : i64} {
  func.func @fused_kernel(%arg0: i32, %arg1: memref<16x128xf32, #tpu.memory_space<vmem>>, %arg2: memref<2x32xf32, #tpu.memory_space<vmem>>, %arg3: memref<32x128xf32, #tpu.memory_space<vmem>>, %arg4: memref<32x32xf32, #tpu.memory_space<vmem>>, %arg5: memref<1x128xf32, #tpu.memory_space<vmem>>, %arg6: memref<1x128xf32, #tpu.memory_space<vmem>>, %arg7: memref<1x128x384xbf16, #tpu.memory_space<vmem>>, %arg8: memref<1x1x384xf32, #tpu.memory_space<vmem>>, %arg9: memref<1x128x128xbf16, #tpu.memory_space<vmem>>, %arg10: memref<1x1x128xf32, #tpu.memory_space<vmem>>, %arg11: memref<1x1x128xf32, #tpu.memory_space<vmem>>, %arg12: memref<1x1x128xf32, #tpu.memory_space<vmem>>, %arg13: memref<1x128x256xbf16, #tpu.memory_space<vmem>>, %arg14: memref<1x1x256xf32, #tpu.memory_space<vmem>>, %arg15: memref<1x256x128xbf16, #tpu.memory_space<vmem>>, %arg16: memref<1x1x128xf32, #tpu.memory_space<vmem>>, %arg17: memref<1x1x128xf32, #tpu.memory_space<vmem>>, %arg18: memref<1x1x128xf32, #tpu.memory_space<vmem>>, %arg19: memref<128x128xbf16, #tpu.memory_space<vmem>>, %arg20: memref<1x128xf32, #tpu.memory_space<vmem>>, %arg21: memref<128x128xbf16, #tpu.memory_space<vmem>>, %arg22: memref<1x128xf32, #tpu.memory_space<vmem>>, %arg23: memref<16x128xf32, #tpu.memory_space<vmem>>, %arg24: memref<16x128xf32, #tpu.memory_space<vmem>>) attributes {dimension_semantics = [#tpu.dimension_semantics<arbitrary>], iteration_bounds = array<i64: 2>, scalar_prefetch = 0 : i64, scratch_operands = 1 : i64, tpu.core_type = #tpu.core_type<tc>, window_params = [{pipeline_mode = #tpu.pipeline_mode<synchronous>, transform_indices = @transform_0, window_bounds = array<i64: 16, 128>}, {pipeline_mode = #tpu.pipeline_mode<synchronous>, transform_indices = @transform_1, window_bounds = array<i64: 2, 32>}, {pipeline_mode = #tpu.pipeline_mode<synchronous>, transform_indices = @transform_2, window_bounds = array<i64: 32, 128>}, {pipeline_mode = #tpu.pipeline_mode<synchronous>, transform_indices = @transform_3, window_bounds = array<i64: 32, 32>}, {pipeline_mode = #tpu.pipeline_mode<synchronous>, transform_indices = @transform_4, window_bounds = array<i64: 1, 128>}, {pipeline_mode = #tpu.pipeline_mode<synchronous>, transform_indices = @transform_5, window_bounds = array<i64: 1, 128>}, {transform_indices = @transform_6, window_bounds = array<i64: 1, 128, 384>}, {transform_indices = @transform_7, window_bounds = array<i64: 1, 1, 384>}, {transform_indices = @transform_8, window_bounds = array<i64: 1, 128, 128>}, {transform_indices = @transform_9, window_bounds = array<i64: 1, 1, 128>}, {transform_indices = @transform_10, window_bounds = array<i64: 1, 1, 128>}, {transform_indices = @transform_11, window_bounds = array<i64: 1, 1, 128>}, {transform_indices = @transform_12, window_bounds = array<i64: 1, 128, 256>}, {transform_indices = @transform_13, window_bounds = array<i64: 1, 1, 256>}, {transform_indices = @transform_14, window_bounds = array<i64: 1, 256, 128>}, {transform_indices = @transform_15, window_bounds = array<i64: 1, 1, 128>}, {transform_indices = @transform_16, window_bounds = array<i64: 1, 1, 128>}, {transform_indices = @transform_17, window_bounds = array<i64: 1, 1, 128>}, {pipeline_mode = #tpu.pipeline_mode<synchronous>, transform_indices = @transform_18, window_bounds = array<i64: 128, 128>}, {pipeline_mode = #tpu.pipeline_mode<synchronous>, transform_indices = @transform_19, window_bounds = array<i64: 1, 128>}, {pipeline_mode = #tpu.pipeline_mode<synchronous>, transform_indices = @transform_20, window_bounds = array<i64: 128, 128>}, {pipeline_mode = #tpu.pipeline_mode<synchronous>, transform_indices = @transform_21, window_bounds = array<i64: 1, 128>}, {pipeline_mode = #tpu.pipeline_mode<synchronous>, transform_indices = @transform_22, window_bounds = array<i64: 16, 128>}]} {
    %c0_i32 = arith.constant 0 : i32
    %0 = arith.cmpi eq, %arg0, %c0_i32 : i32
    %1 = arith.extui %0 : i1 to i32
    %c0_i32_0 = arith.constant 0 : i32
    %2 = arith.cmpi ne, %1, %c0_i32_0 : i32
    scf.if %2 {
      %c0_73 = arith.constant 0 : index
      %c0_74 = arith.constant 0 : index
      %153 = vector.load %arg1[%c0_73, %c0_74] : memref<16x128xf32, #tpu.memory_space<vmem>>, vector<16x128xf32>
      %c0_75 = arith.constant 0 : index
      %c0_76 = arith.constant 0 : index
      %154 = vector.load %arg5[%c0_75, %c0_76] : memref<1x128xf32, #tpu.memory_space<vmem>>, vector<1x128xf32>
      %c0_77 = arith.constant 0 : index
      %c0_78 = arith.constant 0 : index
      %155 = vector.load %arg6[%c0_77, %c0_78] : memref<1x128xf32, #tpu.memory_space<vmem>>, vector<1x128xf32>
      %cst_79 = arith.constant dense<0.000000e+00> : vector<16xf32>
      %156 = vector.multi_reduction <add>, %153, %cst_79 [1] : vector<16x128xf32> to vector<16xf32>
      %157 = vector.shape_cast %156 : vector<16xf32> to vector<16x1xf32>
      %cst_80 = arith.constant 1.280000e+02 : f32
      %158 = vector.broadcast %cst_80 : f32 to vector<16x1xf32>
      %159 = arith.divf %157, %158 : vector<16x1xf32>
      %160 = vector.broadcast %159 : vector<16x1xf32> to vector<16x128xf32>
      %161 = arith.subf %153, %160 : vector<16x128xf32>
      %162 = arith.mulf %161, %161 : vector<16x128xf32>
      %cst_81 = arith.constant dense<0.000000e+00> : vector<16xf32>
      %163 = vector.multi_reduction <add>, %162, %cst_81 [1] : vector<16x128xf32> to vector<16xf32>
      %164 = vector.shape_cast %163 : vector<16xf32> to vector<16x1xf32>
      %cst_82 = arith.constant 1.280000e+02 : f32
      %165 = vector.broadcast %cst_82 : f32 to vector<16x1xf32>
      %166 = arith.divf %164, %165 : vector<16x1xf32>
      %167 = vector.broadcast %159 : vector<16x1xf32> to vector<16x128xf32>
      %168 = arith.subf %153, %167 : vector<16x128xf32>
      %cst_83 = arith.constant 9.99999996E-13 : f32
      %169 = vector.broadcast %cst_83 : f32 to vector<16x1xf32>
      %170 = arith.addf %166, %169 : vector<16x1xf32>
      %171 = math.rsqrt %170 : vector<16x1xf32>
      %172 = vector.broadcast %171 : vector<16x1xf32> to vector<16x128xf32>
      %173 = arith.mulf %168, %172 : vector<16x128xf32>
      %174 = vector.broadcast %154 : vector<1x128xf32> to vector<16x128xf32>
      %175 = arith.mulf %173, %174 : vector<16x128xf32>
      %176 = vector.broadcast %155 : vector<1x128xf32> to vector<16x128xf32>
      %177 = arith.addf %175, %176 : vector<16x128xf32>
      %c0_84 = arith.constant 0 : index
      %c0_85 = arith.constant 0 : index
      %178 = vector.load %arg24[%c0_84, %c0_85] : memref<16x128xf32, #tpu.memory_space<vmem>>, vector<16x128xf32>
      tpu.vector_store %arg24[%c0_84, %c0_85], %177 {strides = array<i32>} : memref<16x128xf32, #tpu.memory_space<vmem>>, vector<16x128xf32>,
    } else {
    }
    %c0 = arith.constant 0 : index
    %c0_1 = arith.constant 0 : index
    %3 = vector.load %arg24[%c0, %c0_1] : memref<16x128xf32, #tpu.memory_space<vmem>>, vector<16x128xf32>
    %c0_2 = arith.constant 0 : index
    %c0_3 = arith.constant 0 : index
    %c0_4 = arith.constant 0 : index
    %4 = vector.load %arg7[%c0_2, %c0_3, %c0_4] : memref<1x128x384xbf16, #tpu.memory_space<vmem>>, vector<1x128x384xbf16>
    %5 = vector.shape_cast %4 : vector<1x128x384xbf16> to vector<128x384xbf16>
    %6 = arith.truncf %3 : vector<16x128xf32> to vector<16x128xbf16>
    %cst = arith.constant dense<0.000000e+00> : vector<16x384xf32>
    %7 = tpu.matmul %6, %5, %cst {dimension_numbers = #tpu.dot_dimension_numbers<[1], [0], [0], [1], [0, 0, 1, 1], [], []>} : vector<16x128xbf16>, vector<128x384xbf16>, vector<16x384xf32> -> vector<16x384xf32>
    %c0_5 = arith.constant 0 : index
    %c0_6 = arith.constant 0 : index
    %c0_7 = arith.constant 0 : index
    %8 = vector.load %arg8[%c0_5, %c0_6, %c0_7] : memref<1x1x384xf32, #tpu.memory_space<vmem>>, vector<1x1x384xf32>
    %9 = vector.shape_cast %8 : vector<1x1x384xf32> to vector<1x384xf32>
    %10 = vector.broadcast %9 : vector<1x384xf32> to vector<16x384xf32>
    %11 = arith.addf %7, %10 : vector<16x384xf32>
    %12 = vector.extract_strided_slice %11 {offsets = [0, 0], sizes = [16, 128], strides = [1, 1]} : vector<16x384xf32> to vector<16x128xf32>
    %13 = vector.extract_strided_slice %11 {offsets = [0, 128], sizes = [16, 128], strides = [1, 1]} : vector<16x384xf32> to vector<16x128xf32>
    %14 = vector.extract_strided_slice %11 {offsets = [0, 256], sizes = [16, 128], strides = [1, 1]} : vector<16x384xf32> to vector<16x128xf32>
    %c0_8 = arith.constant 0 : index
    %c0_9 = arith.constant 0 : index
    %15 = vector.load %arg3[%c0_8, %c0_9] : memref<32x128xf32, #tpu.memory_space<vmem>>, vector<32x128xf32>
    %c0_10 = arith.constant 0 : index
    %c0_11 = arith.constant 0 : index
    %16 = vector.load %arg4[%c0_10, %c0_11] : memref<32x32xf32, #tpu.memory_space<vmem>>, vector<32x32xf32>
    %17 = vector.extract_strided_slice %12 {offsets = [0, 0], sizes = [8, 128], strides = [1, 1]} : vector<16x128xf32> to vector<8x128xf32>
    %18 = vector.extract_strided_slice %13 {offsets = [0, 0], sizes = [8, 128], strides = [1, 1]} : vector<16x128xf32> to vector<8x128xf32>
    %19 = vector.extract_strided_slice %14 {offsets = [0, 0], sizes = [8, 128], strides = [1, 1]} : vector<16x128xf32> to vector<8x128xf32>
    %20 = tpu.concatenate %18, %18, %18, %18 in 0 : vector<8x128xf32>, vector<8x128xf32>, vector<8x128xf32>, vector<8x128xf32> -> vector<32x128xf32>
    %21 = arith.mulf %20, %15 : vector<32x128xf32>
    %22 = tpu.concatenate %19, %19, %19, %19 in 0 : vector<8x128xf32>, vector<8x128xf32>, vector<8x128xf32>, vector<8x128xf32> -> vector<32x128xf32>
    %23 = arith.mulf %22, %15 : vector<32x128xf32>
    %cst_12 = arith.constant dense<0.000000e+00> : vector<8x32xf32>
    %24 = tpu.matmul %17, %21, %cst_12 {dimension_numbers = #tpu.dot_dimension_numbers<[1], [1], [0], [0], [0, 0, 1, 0], [], []>} : vector<8x128xf32>, vector<32x128xf32>, vector<8x32xf32> -> vector<8x32xf32>
    %c0_13 = arith.constant 0 : index
    %c0_14 = arith.constant 0 : index
    %25 = vector.load %arg2[%c0_13, %c0_14] : memref<2x32xf32, #tpu.memory_space<vmem>>, vector<1x32xf32>
    %26 = vector.broadcast %25 : vector<1x32xf32> to vector<8x32xf32>
    %27 = arith.addf %24, %26 : vector<8x32xf32>
    %cst_15 = arith.constant dense<0xFF800000> : vector<8xf32>
    %28 = vector.multi_reduction <maximumf>, %27, %cst_15 [1] : vector<8x32xf32> to vector<8xf32>
    %29 = vector.shape_cast %28 : vector<8xf32> to vector<8x1xf32>
    %30 = vector.broadcast %29 : vector<8x1xf32> to vector<8x32xf32>
    %31 = arith.subf %27, %30 : vector<8x32xf32>
    %32 = math.exp %31 : vector<8x32xf32>
    %cst_16 = arith.constant dense<0.000000e+00> : vector<8x32xf32>
    %33 = tpu.matmul %32, %16, %cst_16 {dimension_numbers = #tpu.dot_dimension_numbers<[1], [0], [0], [1], [0, 0, 1, 1], [], []>} : vector<8x32xf32>, vector<32x32xf32>, vector<8x32xf32> -> vector<8x32xf32>
    %34 = tpu.reciprocal %33 {approx = true} : vector<8x32xf32> -> vector<8x32xf32>
    %35 = arith.mulf %32, %34 : vector<8x32xf32>
    %cst_17 = arith.constant dense<0.000000e+00> : vector<8x128xf32>
    %36 = tpu.matmul %35, %23, %cst_17 {dimension_numbers = #tpu.dot_dimension_numbers<[1], [0], [0], [1], [0, 0, 1, 1], [], []>} : vector<8x32xf32>, vector<32x128xf32>, vector<8x128xf32> -> vector<8x128xf32>
    %37 = vector.extract_strided_slice %12 {offsets = [8, 0], sizes = [8, 128], strides = [1, 1]} : vector<16x128xf32> to vector<8x128xf32>
    %38 = vector.extract_strided_slice %13 {offsets = [8, 0], sizes = [8, 128], strides = [1, 1]} : vector<16x128xf32> to vector<8x128xf32>
    %39 = vector.extract_strided_slice %14 {offsets = [8, 0], sizes = [8, 128], strides = [1, 1]} : vector<16x128xf32> to vector<8x128xf32>
    %40 = tpu.concatenate %38, %38, %38, %38 in 0 : vector<8x128xf32>, vector<8x128xf32>, vector<8x128xf32>, vector<8x128xf32> -> vector<32x128xf32>
    %41 = arith.mulf %40, %15 : vector<32x128xf32>
    %42 = tpu.concatenate %39, %39, %39, %39 in 0 : vector<8x128xf32>, vector<8x128xf32>, vector<8x128xf32>, vector<8x128xf32> -> vector<32x128xf32>
    %43 = arith.mulf %42, %15 : vector<32x128xf32>
    %cst_18 = arith.constant dense<0.000000e+00> : vector<8x32xf32>
    %44 = tpu.matmul %37, %41, %cst_18 {dimension_numbers = #tpu.dot_dimension_numbers<[1], [1], [0], [0], [0, 0, 1, 0], [], []>} : vector<8x128xf32>, vector<32x128xf32>, vector<8x32xf32> -> vector<8x32xf32>
    %c1 = arith.constant 1 : index
    %c0_19 = arith.constant 0 : index
    %45 = vector.load %arg2[%c1, %c0_19] : memref<2x32xf32, #tpu.memory_space<vmem>>, vector<1x32xf32>
    %46 = vector.broadcast %45 : vector<1x32xf32> to vector<8x32xf32>
    %47 = arith.addf %44, %46 : vector<8x32xf32>
    %cst_20 = arith.constant dense<0xFF800000> : vector<8xf32>
    %48 = vector.multi_reduction <maximumf>, %47, %cst_20 [1] : vector<8x32xf32> to vector<8xf32>
    %49 = vector.shape_cast %48 : vector<8xf32> to vector<8x1xf32>
    %50 = vector.broadcast %49 : vector<8x1xf32> to vector<8x32xf32>
    %51 = arith.subf %47, %50 : vector<8x32xf32>
    %52 = math.exp %51 : vector<8x32xf32>
    %cst_21 = arith.constant dense<0.000000e+00> : vector<8x32xf32>
    %53 = tpu.matmul %52, %16, %cst_21 {dimension_numbers = #tpu.dot_dimension_numbers<[1], [0], [0], [1], [0, 0, 1, 1], [], []>} : vector<8x32xf32>, vector<32x32xf32>, vector<8x32xf32> -> vector<8x32xf32>
    %54 = tpu.reciprocal %53 {approx = true} : vector<8x32xf32> -> vector<8x32xf32>
    %55 = arith.mulf %52, %54 : vector<8x32xf32>
    %cst_22 = arith.constant dense<0.000000e+00> : vector<8x128xf32>
    %56 = tpu.matmul %55, %43, %cst_22 {dimension_numbers = #tpu.dot_dimension_numbers<[1], [0], [0], [1], [0, 0, 1, 1], [], []>} : vector<8x32xf32>, vector<32x128xf32>, vector<8x128xf32> -> vector<8x128xf32>
    %57 = tpu.concatenate %36, %56 in 0 : vector<8x128xf32>, vector<8x128xf32> -> vector<16x128xf32>
    %c0_23 = arith.constant 0 : index
    %c0_24 = arith.constant 0 : index
    %c0_25 = arith.constant 0 : index
    %58 = vector.load %arg9[%c0_23, %c0_24, %c0_25] : memref<1x128x128xbf16, #tpu.memory_space<vmem>>, vector<1x128x128xbf16>
    %59 = vector.shape_cast %58 : vector<1x128x128xbf16> to vector<128x128xbf16>
    %60 = arith.truncf %57 : vector<16x128xf32> to vector<16x128xbf16>
    %cst_26 = arith.constant dense<0.000000e+00> : vector<16x128xf32>
    %61 = tpu.matmul %60, %59, %cst_26 {dimension_numbers = #tpu.dot_dimension_numbers<[1], [0], [0], [1], [0, 0, 1, 1], [], []>} : vector<16x128xbf16>, vector<128x128xbf16>, vector<16x128xf32> -> vector<16x128xf32>
    %c0_27 = arith.constant 0 : index
    %c0_28 = arith.constant 0 : index
    %c0_29 = arith.constant 0 : index
    %62 = vector.load %arg10[%c0_27, %c0_28, %c0_29] : memref<1x1x128xf32, #tpu.memory_space<vmem>>, vector<1x1x128xf32>
    %63 = vector.shape_cast %62 : vector<1x1x128xf32> to vector<1x128xf32>
    %64 = vector.broadcast %63 : vector<1x128xf32> to vector<16x128xf32>
    %65 = arith.addf %61, %64 : vector<16x128xf32>
    %66 = arith.addf %3, %65 : vector<16x128xf32>
    %c0_30 = arith.constant 0 : index
    %c0_31 = arith.constant 0 : index
    %c0_32 = arith.constant 0 : index
    %67 = vector.load %arg11[%c0_30, %c0_31, %c0_32] : memref<1x1x128xf32, #tpu.memory_space<vmem>>, vector<1x1x128xf32>
    %68 = vector.shape_cast %67 : vector<1x1x128xf32> to vector<1x128xf32>
    %c0_33 = arith.constant 0 : index
    %c0_34 = arith.constant 0 : index
    %c0_35 = arith.constant 0 : index
    %69 = vector.load %arg12[%c0_33, %c0_34, %c0_35] : memref<1x1x128xf32, #tpu.memory_space<vmem>>, vector<1x1x128xf32>
    %70 = vector.shape_cast %69 : vector<1x1x128xf32> to vector<1x128xf32>
    %cst_36 = arith.constant dense<0.000000e+00> : vector<16xf32>
    %71 = vector.multi_reduction <add>, %66, %cst_36 [1] : vector<16x128xf32> to vector<16xf32>
    %72 = vector.shape_cast %71 : vector<16xf32> to vector<16x1xf32>
    %cst_37 = arith.constant 1.280000e+02 : f32
    %73 = vector.broadcast %cst_37 : f32 to vector<16x1xf32>
    %74 = arith.divf %72, %73 : vector<16x1xf32>
    %75 = vector.broadcast %74 : vector<16x1xf32> to vector<16x128xf32>
    %76 = arith.subf %66, %75 : vector<16x128xf32>
    %77 = arith.mulf %76, %76 : vector<16x128xf32>
    %cst_38 = arith.constant dense<0.000000e+00> : vector<16xf32>
    %78 = vector.multi_reduction <add>, %77, %cst_38 [1] : vector<16x128xf32> to vector<16xf32>
    %79 = vector.shape_cast %78 : vector<16xf32> to vector<16x1xf32>
    %cst_39 = arith.constant 1.280000e+02 : f32
    %80 = vector.broadcast %cst_39 : f32 to vector<16x1xf32>
    %81 = arith.divf %79, %80 : vector<16x1xf32>
    %82 = vector.broadcast %74 : vector<16x1xf32> to vector<16x128xf32>
    %83 = arith.subf %66, %82 : vector<16x128xf32>
    %cst_40 = arith.constant 9.99999996E-13 : f32
    %84 = vector.broadcast %cst_40 : f32 to vector<16x1xf32>
    %85 = arith.addf %81, %84 : vector<16x1xf32>
    %86 = math.rsqrt %85 : vector<16x1xf32>
    %87 = vector.broadcast %86 : vector<16x1xf32> to vector<16x128xf32>
    %88 = arith.mulf %83, %87 : vector<16x128xf32>
    %89 = vector.broadcast %68 : vector<1x128xf32> to vector<16x128xf32>
    %90 = arith.mulf %88, %89 : vector<16x128xf32>
    %91 = vector.broadcast %70 : vector<1x128xf32> to vector<16x128xf32>
    %92 = arith.addf %90, %91 : vector<16x128xf32>
    %c0_41 = arith.constant 0 : index
    %c0_42 = arith.constant 0 : index
    %c0_43 = arith.constant 0 : index
    %93 = vector.load %arg13[%c0_41, %c0_42, %c0_43] : memref<1x128x256xbf16, #tpu.memory_space<vmem>>, vector<1x128x256xbf16>
    %94 = vector.shape_cast %93 : vector<1x128x256xbf16> to vector<128x256xbf16>
    %95 = arith.truncf %92 : vector<16x128xf32> to vector<16x128xbf16>
    %cst_44 = arith.constant dense<0.000000e+00> : vector<16x256xf32>
    %96 = tpu.matmul %95, %94, %cst_44 {dimension_numbers = #tpu.dot_dimension_numbers<[1], [0], [0], [1], [0, 0, 1, 1], [], []>} : vector<16x128xbf16>, vector<128x256xbf16>, vector<16x256xf32> -> vector<16x256xf32>
    %c0_45 = arith.constant 0 : index
    %c0_46 = arith.constant 0 : index
    %c0_47 = arith.constant 0 : index
    %97 = vector.load %arg14[%c0_45, %c0_46, %c0_47] : memref<1x1x256xf32, #tpu.memory_space<vmem>>, vector<1x1x256xf32>
    %98 = vector.shape_cast %97 : vector<1x1x256xf32> to vector<1x256xf32>
    %99 = vector.broadcast %98 : vector<1x256xf32> to vector<16x256xf32>
    %100 = arith.addf %96, %99 : vector<16x256xf32>
    %101 = arith.mulf %100, %100 : vector<16x256xf32>
    %102 = arith.mulf %100, %101 : vector<16x256xf32>
    %cst_48 = arith.constant 4.471500e-02 : f32
    %103 = vector.broadcast %cst_48 : f32 to vector<16x256xf32>
    %104 = arith.mulf %103, %102 : vector<16x256xf32>
    %105 = arith.addf %100, %104 : vector<16x256xf32>
    %cst_49 = arith.constant 0.797884583 : f32
    %106 = vector.broadcast %cst_49 : f32 to vector<16x256xf32>
    %107 = arith.mulf %106, %105 : vector<16x256xf32>
    %108 = math.tanh %107 : vector<16x256xf32>
    %cst_50 = arith.constant 1.000000e+00 : f32
    %109 = vector.broadcast %cst_50 : f32 to vector<16x256xf32>
    %110 = arith.addf %109, %108 : vector<16x256xf32>
    %cst_51 = arith.constant 5.000000e-01 : f32
    %111 = vector.broadcast %cst_51 : f32 to vector<16x256xf32>
    %112 = arith.mulf %111, %110 : vector<16x256xf32>
    %113 = arith.mulf %100, %112 : vector<16x256xf32>
    %c0_52 = arith.constant 0 : index
    %c0_53 = arith.constant 0 : index
    %c0_54 = arith.constant 0 : index
    %114 = vector.load %arg15[%c0_52, %c0_53, %c0_54] : memref<1x256x128xbf16, #tpu.memory_space<vmem>>, vector<1x256x128xbf16>
    %115 = vector.shape_cast %114 : vector<1x256x128xbf16> to vector<256x128xbf16>
    %116 = arith.truncf %113 : vector<16x256xf32> to vector<16x256xbf16>
    %cst_55 = arith.constant dense<0.000000e+00> : vector<16x128xf32>
    %117 = tpu.matmul %116, %115, %cst_55 {dimension_numbers = #tpu.dot_dimension_numbers<[1], [0], [0], [1], [0, 0, 1, 1], [], []>} : vector<16x256xbf16>, vector<256x128xbf16>, vector<16x128xf32> -> vector<16x128xf32>
    %c0_56 = arith.constant 0 : index
    %c0_57 = arith.constant 0 : index
    %c0_58 = arith.constant 0 : index
    %118 = vector.load %arg16[%c0_56, %c0_57, %c0_58] : memref<1x1x128xf32, #tpu.memory_space<vmem>>, vector<1x1x128xf32>
    %119 = vector.shape_cast %118 : vector<1x1x128xf32> to vector<1x128xf32>
    %120 = vector.broadcast %119 : vector<1x128xf32> to vector<16x128xf32>
    %121 = arith.addf %117, %120 : vector<16x128xf32>
    %122 = arith.addf %92, %121 : vector<16x128xf32>
    %c0_59 = arith.constant 0 : index
    %c0_60 = arith.constant 0 : index
    %c0_61 = arith.constant 0 : index
    %123 = vector.load %arg17[%c0_59, %c0_60, %c0_61] : memref<1x1x128xf32, #tpu.memory_space<vmem>>, vector<1x1x128xf32>
    %124 = vector.shape_cast %123 : vector<1x1x128xf32> to vector<1x128xf32>
    %c0_62 = arith.constant 0 : index
    %c0_63 = arith.constant 0 : index
    %c0_64 = arith.constant 0 : index
    %125 = vector.load %arg18[%c0_62, %c0_63, %c0_64] : memref<1x1x128xf32, #tpu.memory_space<vmem>>, vector<1x1x128xf32>
    %126 = vector.shape_cast %125 : vector<1x1x128xf32> to vector<1x128xf32>
    %cst_65 = arith.constant dense<0.000000e+00> : vector<16xf32>
    %127 = vector.multi_reduction <add>, %122, %cst_65 [1] : vector<16x128xf32> to vector<16xf32>
    %128 = vector.shape_cast %127 : vector<16xf32> to vector<16x1xf32>
    %cst_66 = arith.constant 1.280000e+02 : f32
    %129 = vector.broadcast %cst_66 : f32 to vector<16x1xf32>
    %130 = arith.divf %128, %129 : vector<16x1xf32>
    %131 = vector.broadcast %130 : vector<16x1xf32> to vector<16x128xf32>
    %132 = arith.subf %122, %131 : vector<16x128xf32>
    %133 = arith.mulf %132, %132 : vector<16x128xf32>
    %cst_67 = arith.constant dense<0.000000e+00> : vector<16xf32>
    %134 = vector.multi_reduction <add>, %133, %cst_67 [1] : vector<16x128xf32> to vector<16xf32>
    %135 = vector.shape_cast %134 : vector<16xf32> to vector<16x1xf32>
    %cst_68 = arith.constant 1.280000e+02 : f32
    %136 = vector.broadcast %cst_68 : f32 to vector<16x1xf32>
    %137 = arith.divf %135, %136 : vector<16x1xf32>
    %138 = vector.broadcast %130 : vector<16x1xf32> to vector<16x128xf32>
    %139 = arith.subf %122, %138 : vector<16x128xf32>
    %cst_69 = arith.constant 9.99999996E-13 : f32
    %140 = vector.broadcast %cst_69 : f32 to vector<16x1xf32>
    %141 = arith.addf %137, %140 : vector<16x1xf32>
    %142 = math.rsqrt %141 : vector<16x1xf32>
    %143 = vector.broadcast %142 : vector<16x1xf32> to vector<16x128xf32>
    %144 = arith.mulf %139, %143 : vector<16x128xf32>
    %145 = vector.broadcast %124 : vector<1x128xf32> to vector<16x128xf32>
    %146 = arith.mulf %144, %145 : vector<16x128xf32>
    %147 = vector.broadcast %126 : vector<1x128xf32> to vector<16x128xf32>
    %148 = arith.addf %146, %147 : vector<16x128xf32>
    %c0_70 = arith.constant 0 : index
    %c0_71 = arith.constant 0 : index
    %149 = vector.load %arg24[%c0_70, %c0_71] : memref<16x128xf32, #tpu.memory_space<vmem>>, vector<16x128xf32>
    tpu.vector_store %arg24[%c0_70, %c0_71], %148 {strides = array<i32>} : memref<16x128xf32, #tpu.memory_space<vmem>>, vector<16x128xf32>,
    %c1_i32 = arith.constant 1 : i32
    %150 = arith.cmpi eq, %arg0, %c1_i32 : i32
    %151 = arith.extui %150 : i1 to i32
    %c0_i32_72 = arith.constant 0 : i32
    %152 = arith.cmpi ne, %151, %c0_i32_72 : i32
    scf.if %152 {
      %c0_73 = arith.constant 0 : index
      %c0_74 = arith.constant 0 : index
      %153 = vector.load %arg19[%c0_73, %c0_74] : memref<128x128xbf16, #tpu.memory_space<vmem>>, vector<128x128xbf16>
      %154 = arith.truncf %148 : vector<16x128xf32> to vector<16x128xbf16>
      %cst_75 = arith.constant dense<0.000000e+00> : vector<16x128xf32>
      %155 = tpu.matmul %154, %153, %cst_75 {dimension_numbers = #tpu.dot_dimension_numbers<[1], [0], [0], [1], [0, 0, 1, 1], [], []>} : vector<16x128xbf16>, vector<128x128xbf16>, vector<16x128xf32> -> vector<16x128xf32>
      %c0_76 = arith.constant 0 : index
      %c0_77 = arith.constant 0 : index
      %156 = vector.load %arg20[%c0_76, %c0_77] : memref<1x128xf32, #tpu.memory_space<vmem>>, vector<1x128xf32>
      %157 = vector.broadcast %156 : vector<1x128xf32> to vector<16x128xf32>
      %158 = arith.addf %155, %157 : vector<16x128xf32>
      %cst_78 = arith.constant 0.000000e+00 : f32
      %159 = vector.broadcast %cst_78 : f32 to vector<16x128xf32>
      %160 = arith.maximumf %158, %159 : vector<16x128xf32>
      %c0_79 = arith.constant 0 : index
      %c0_80 = arith.constant 0 : index
      %161 = vector.load %arg21[%c0_79, %c0_80] : memref<128x128xbf16, #tpu.memory_space<vmem>>, vector<128x128xbf16>
      %162 = arith.truncf %160 : vector<16x128xf32> to vector<16x128xbf16>
      %cst_81 = arith.constant dense<0.000000e+00> : vector<16x128xf32>
      %163 = tpu.matmul %162, %161, %cst_81 {dimension_numbers = #tpu.dot_dimension_numbers<[1], [0], [0], [1], [0, 0, 1, 1], [], []>} : vector<16x128xbf16>, vector<128x128xbf16>, vector<16x128xf32> -> vector<16x128xf32>
      %c0_82 = arith.constant 0 : index
      %c0_83 = arith.constant 0 : index
      %164 = vector.load %arg22[%c0_82, %c0_83] : memref<1x128xf32, #tpu.memory_space<vmem>>, vector<1x128xf32>
      %165 = vector.broadcast %164 : vector<1x128xf32> to vector<16x128xf32>
      %166 = arith.addf %163, %165 : vector<16x128xf32>
      %c0_84 = arith.constant 0 : index
      %c0_85 = arith.constant 0 : index
      %167 = vector.load %arg23[%c0_84, %c0_85] : memref<16x128xf32, #tpu.memory_space<vmem>>, vector<16x128xf32>
      tpu.vector_store %arg23[%c0_84, %c0_85], %166 {strides = array<i32>} : memref<16x128xf32, #tpu.memory_space<vmem>>, vector<16x128xf32>,
    } else {
    }
    return
  }
  func.func @transform_0(%arg0: i32) -> (i32, i32) {
    %c0_i32 = arith.constant 0 : i32
    %c0_i32_0 = arith.constant 0 : i32
    %c0_i32_1 = arith.constant 0 : i32
    return %c0_i32, %c0_i32_0 : i32, i32
  }
  func.func @transform_1(%arg0: i32) -> (i32, i32) {
    %c0_i32 = arith.constant 0 : i32
    %c0_i32_0 = arith.constant 0 : i32
    %c0_i32_1 = arith.constant 0 : i32
    return %c0_i32, %c0_i32_0 : i32, i32
  }
  func.func @transform_2(%arg0: i32) -> (i32, i32) {
    %c0_i32 = arith.constant 0 : i32
    %c0_i32_0 = arith.constant 0 : i32
    %c0_i32_1 = arith.constant 0 : i32
    return %c0_i32, %c0_i32_0 : i32, i32
  }
  func.func @transform_3(%arg0: i32) -> (i32, i32) {
    %c0_i32 = arith.constant 0 : i32
    %c0_i32_0 = arith.constant 0 : i32
    %c0_i32_1 = arith.constant 0 : i32
    return %c0_i32, %c0_i32_0 : i32, i32
  }
  func.func @transform_4(%arg0: i32) -> (i32, i32) {
    %c0_i32 = arith.constant 0 : i32
    %c0_i32_0 = arith.constant 0 : i32
    %c0_i32_1 = arith.constant 0 : i32
    return %c0_i32, %c0_i32_0 : i32, i32
  }
  func.func @transform_5(%arg0: i32) -> (i32, i32) {
    %c0_i32 = arith.constant 0 : i32
    %c0_i32_0 = arith.constant 0 : i32
    %c0_i32_1 = arith.constant 0 : i32
    return %c0_i32, %c0_i32_0 : i32, i32
  }
  func.func @transform_6(%arg0: i32) -> (i32, i32, i32) {
    %c0_i32 = arith.constant 0 : i32
    %c0_i32_0 = arith.constant 0 : i32
    %c0_i32_1 = arith.constant 0 : i32
    return %arg0, %c0_i32, %c0_i32_0 : i32, i32, i32
  }
  func.func @transform_7(%arg0: i32) -> (i32, i32, i32) {
    %c0_i32 = arith.constant 0 : i32
    %c0_i32_0 = arith.constant 0 : i32
    %c0_i32_1 = arith.constant 0 : i32
    return %arg0, %c0_i32, %c0_i32_0 : i32, i32, i32
  }
  func.func @transform_8(%arg0: i32) -> (i32, i32, i32) {
    %c0_i32 = arith.constant 0 : i32
    %c0_i32_0 = arith.constant 0 : i32
    %c0_i32_1 = arith.constant 0 : i32
    return %arg0, %c0_i32, %c0_i32_0 : i32, i32, i32
  }
  func.func @transform_9(%arg0: i32) -> (i32, i32, i32) {
    %c0_i32 = arith.constant 0 : i32
    %c0_i32_0 = arith.constant 0 : i32
    %c0_i32_1 = arith.constant 0 : i32
    return %arg0, %c0_i32, %c0_i32_0 : i32, i32, i32
  }
  func.func @transform_10(%arg0: i32) -> (i32, i32, i32) {
    %c0_i32 = arith.constant 0 : i32
    %c0_i32_0 = arith.constant 0 : i32
    %c0_i32_1 = arith.constant 0 : i32
    return %arg0, %c0_i32, %c0_i32_0 : i32, i32, i32
  }
  func.func @transform_11(%arg0: i32) -> (i32, i32, i32) {
    %c0_i32 = arith.constant 0 : i32
    %c0_i32_0 = arith.constant 0 : i32
    %c0_i32_1 = arith.constant 0 : i32
    return %arg0, %c0_i32, %c0_i32_0 : i32, i32, i32
  }
  func.func @transform_12(%arg0: i32) -> (i32, i32, i32) {
    %c0_i32 = arith.constant 0 : i32
    %c0_i32_0 = arith.constant 0 : i32
    %c0_i32_1 = arith.constant 0 : i32
    return %arg0, %c0_i32, %c0_i32_0 : i32, i32, i32
  }
  func.func @transform_13(%arg0: i32) -> (i32, i32, i32) {
    %c0_i32 = arith.constant 0 : i32
    %c0_i32_0 = arith.constant 0 : i32
    %c0_i32_1 = arith.constant 0 : i32
    return %arg0, %c0_i32, %c0_i32_0 : i32, i32, i32
  }
  func.func @transform_14(%arg0: i32) -> (i32, i32, i32) {
    %c0_i32 = arith.constant 0 : i32
    %c0_i32_0 = arith.constant 0 : i32
    %c0_i32_1 = arith.constant 0 : i32
    return %arg0, %c0_i32, %c0_i32_0 : i32, i32, i32
  }
  func.func @transform_15(%arg0: i32) -> (i32, i32, i32) {
    %c0_i32 = arith.constant 0 : i32
    %c0_i32_0 = arith.constant 0 : i32
    %c0_i32_1 = arith.constant 0 : i32
    return %arg0, %c0_i32, %c0_i32_0 : i32, i32, i32
  }
  func.func @transform_16(%arg0: i32) -> (i32, i32, i32) {
    %c0_i32 = arith.constant 0 : i32
    %c0_i32_0 = arith.constant 0 : i32
    %c0_i32_1 = arith.constant 0 : i32
    return %arg0, %c0_i32, %c0_i32_0 : i32, i32, i32
  }
  func.func @transform_17(%arg0: i32) -> (i32, i32, i32) {
    %c0_i32 = arith.constant 0 : i32
    %c0_i32_0 = arith.constant 0 : i32
    %c0_i32_1 = arith.constant 0 : i32
    return %arg0, %c0_i32, %c0_i32_0 : i32, i32, i32
  }
  func.func @transform_18(%arg0: i32) -> (i32, i32) {
    %c0_i32 = arith.constant 0 : i32
    %c0_i32_0 = arith.constant 0 : i32
    %c0_i32_1 = arith.constant 0 : i32
    return %c0_i32, %c0_i32_0 : i32, i32
  }
  func.func @transform_19(%arg0: i32) -> (i32, i32) {
    %c0_i32 = arith.constant 0 : i32
    %c0_i32_0 = arith.constant 0 : i32
    %c0_i32_1 = arith.constant 0 : i32
    return %c0_i32, %c0_i32_0 : i32, i32
  }
  func.func @transform_20(%arg0: i32) -> (i32, i32) {
    %c0_i32 = arith.constant 0 : i32
    %c0_i32_0 = arith.constant 0 : i32
    %c0_i32_1 = arith.constant 0 : i32
    return %c0_i32, %c0_i32_0 : i32, i32
  }
  func.func @transform_21(%arg0: i32) -> (i32, i32) {
    %c0_i32 = arith.constant 0 : i32
    %c0_i32_0 = arith.constant 0 : i32
    %c0_i32_1 = arith.constant 0 : i32
    return %c0_i32, %c0_i32_0 : i32, i32
  }
  func.func @transform_22(%arg0: i32) -> (i32, i32) {
    %c0_i32 = arith.constant 0 : i32
    %c0_i32_0 = arith.constant 0 : i32
    %c0_i32_1 = arith.constant 0 : i32
    return %c0_i32, %c0_i32_0 : i32, i32
  }
}

</mosaic_0001>

<bundles_post_ra>
// kernel: tpu_custom_call.1
= control target key start
LH: loop header
LB: loop body
LE: loop exit
PB: predicated region body
PF: predicated region fallthrough
CT: control target
= control target key end

     0   :  { %s4712_s0 = inlined_call_operand.hbm [shape: f32[16,128], index: 0, kind: input, shape index: {}]   ;;  %s4713_s1 = inlined_call_operand.hbm [shape: f32[2,32], index: 1, kind: input, shape index: {}]   ;;  %s4714_s2 = inlined_call_operand.hbm [shape: f32[32,128], index: 2, kind: input, shape index: {}]   ;;  %s4715_s3 = inlined_call_operand.hbm [shape: f32[32,32], index: 3, kind: input, shape index: {}]   ;;  %s4716_s4 = inlined_call_operand.hbm [shape: f32[1,128], index: 4, kind: input, shape index: {}]   ;;  %s4717_s5 = inlined_call_operand.hbm [shape: f32[1,128], index: 5, kind: input, shape index: {}]   ;;  %s4718_s6 = inlined_call_operand.hbm [shape: bf16[2,128,384], index: 6, kind: input, shape index: {}]   ;;  %s4719_s7 = inlined_call_operand.vmem [shape: f32[2,1,384], index: 7, kind: input, shape index: {}]   ;;  %s4720_s8 = inlined_call_operand.hbm [shape: bf16[2,128,128], index: 8, kind: input, shape index: {}]   ;;  %s4721_s9 = inlined_call_operand.vmem [shape: f32[2,1,128], index: 9, kind: input, shape index: {}]   ;;  %s4722_s10 = inlined_call_operand.vmem [shape: f32[2,1,128], index: 10, kind: input, shape index: {}]   ;;  %s4723_s11 = inlined_call_operand.vmem [shape: f32[2,1,128], index: 11, kind: input, shape index: {}]   ;;  %s4724_s12 = inlined_call_operand.hbm [shape: bf16[2,128,256], index: 12, kind: input, shape index: {}]   ;;  %s4725_s13 = inlined_call_operand.vmem [shape: f32[2,1,256], index: 13, kind: input, shape index: {}]   ;;  %s4726_s14 = inlined_call_operand.hbm [shape: bf16[2,256,128], index: 14, kind: input, shape index: {}]   ;;  %s4727_s15 = inlined_call_operand.vmem [shape: f32[2,1,128], index: 15, kind: input, shape index: {}]   ;;  %s4728_s16 = inlined_call_operand.vmem [shape: f32[2,1,128], index: 16, kind: input, shape index: {}]   ;;  %s4729_s17 = inlined_call_operand.vmem [shape: f32[2,1,128], index: 17, kind: input, shape index: {}]   ;;  %s4730_s18 = inlined_call_operand.hbm [shape: bf16[128,128], index: 18, kind: input, shape index: {}]   ;;  %s4731_s19 = inlined_call_operand.vmem [shape: f32[1,128], index: 19, kind: input, shape index: {}]   ;;  %s4732_s20 = inlined_call_operand.hbm [shape: bf16[128,128], index: 20, kind: input, shape index: {}]   ;;  %s4733_s21 = inlined_call_operand.vmem [shape: f32[1,128], index: 21, kind: input, shape index: {}]   ;;  %s4734_s22 = inlined_call_operand.hbm [shape: f32[16,128], index: 22, kind: output, shape index: {}]  }
   0x1   :  { %4766 = sst [smem:[#allocation32_spill]] %s4712_s0 }
   0x2   :  { %4767 = sst [smem:[#allocation33_spill]] %s4713_s1 }
   0x3   :  { %4768 = sst [smem:[#allocation34_spill]] %s4714_s2 }
   0x4   :  { %4769 = sst [smem:[#allocation35_spill]] %s4715_s3 }
   0x5   :  { %4770 = sst [smem:[#allocation36_spill]] %s4716_s4 }
   0x6   :  { %4771 = sst [smem:[#allocation37_spill]] %s4717_s5 }
   0x7   :  { %4772 = sst [smem:[#allocation38_spill]] %s4718_s6 }
   0x8   :  { %4773 = sst [smem:[#allocation39_spill]] %s4719_s7 }
   0x9   :  { %4774 = sst [smem:[#allocation40_spill]] %s4720_s8 }
   0xa   :  { %4775 = sst [smem:[#allocation41_spill]] %s4722_s10 }
   0xb   :  { %4776 = sst [smem:[#allocation42_spill]] %s4723_s11 }
   0xc   :  { %4777 = sst [smem:[#allocation43_spill]] %s4724_s12 }
   0xd   :  { %4778 = sst [smem:[#allocation44_spill]] %s4725_s13 }
   0xe   :  { %4779 = sst [smem:[#allocation45_spill]] %s4726_s14 }
   0xf   :  { %4780 = sst [smem:[#allocation46_spill]] %s4727_s15 }
  0x10   :  { %4781 = sst [smem:[#allocation47_spill]] %s4728_s16 }
  0x11   :  { %4782 = sst [smem:[#allocation48_spill]] %s4729_s17 }
  0x12   :  { %4783 = sst [smem:[#allocation49_spill]] %s4731_s19 }
  0x13   :  { %4784 = sst [smem:[#allocation50_spill]] %s4733_s21 }
  0x14   :  { %4785 = sst [smem:[#allocation51_spill]] %s4734_s22 }
  0x15   :  { %27 = vsyncpa [#allocation4], 0 }
  0x16   :  { %28 = vsyncpa [#allocation7], 0 }
  0x17   :  { %29 = vsyncpa [#allocation10], 0 }
  0x18   :  { %30 = vsyncpa [#allocation13], 0 }
  0x19   :  { %31 = vsyncpa [#allocation5], 0  ;;  %s4100_s3 = smov 0   ;;  %s4102_s28 = smov 0  }
  0x1a   :  { %s4104_s29 = smov 0   ;;  %s4106_s30 = smov 0  }
  0x1b LB: > { %4786 = sst [smem:[#allocation29_spill]] %s3953_s29  ;;  %s3959_s4 = smov [#allocation3]   ;;  %s3957_s30 = sphi %s4106_s30, %s4853_s30   ;;  %s3953_s29 = sphi %s4104_s29, %s4855_s29   ;;  %s3949_s28 = sphi %s4102_s28, %s4857_s28   ;;  %s3945_s3 = sphi %s4100_s3, %s4856_s3  }
  0x1c   : > { %s597_s0 = sshll.u32 %s3959_s4, 4  ;;  %s4121_s23 = sadd.s32 4294967295, %s3957_s30   ;;  %s598_s0 = int_to_ptr.vmem [resolvable:$true] %s597_s0 }
  0x1d   : > { %p2896_p0 = scmp.ge.s32.totalorder %s3957_s30, 1  ;;  %p4743_p1 = scmp.eq.s32.totalorder %s4121_s23, 0 }
  0x1e   : > { %p585_p2 = scmp.lt.s32.totalorder %s3957_s30, 3  ;;  %s4140_s24 = sadd.s32 1, %s3957_s30  }
  0x1f   : > { %4789 = sst [smem:[#allocation30_spill]] %s4140_s24  ;;  %s3562_s25 = scalar_lea.vmem %s598_s0, 256 }
  0x20   : > { %p4127_p4 = pnand %p2896_p0, %p585_p2  ;;  %p3563_p8 = scmp.ne.s32.totalorder %s598_s0, %s3562_s25 }
  0x21   : > { %p3570_p11 = scmp.lt.s32.totalorder %s598_s0, %s598_s0  ;;  %p3571_p12 = scmp.lt.s32.totalorder %s3562_s25, %s3562_s25 }
  0x22   : > { %s4787_s1 = scalar_select %p4127_p4, 1, 0 }
  0x23   : > { %p3316_p5 = pneg %p4127_p4  ;;  %p3572_p13 = por %p3571_p12, %p3570_p11 }
  0x25   : > { %p4135_p6 = pnand %p3316_p5, %p4743_p1 }
  0x27   : > { %s4788_s5 = scalar_select %p4135_p6, 1, 0 }
  0x28   : > { %p4144_p7 = pneg %p4135_p6 }
  0x2a   : > { %s4790_s6 = scalar_select %p4144_p7, 1, 0 }
  0x2b   : > { %p3565_p9 = pnand %p3563_p8, %p4144_p7 }
  0x2d   : > { %p3566_p10 = pneg %p3565_p9 }
  0x2f   : > { %p3573_p0 = pnand %p3572_p13, %p3566_p10 }
  0x31   : > { %3576 = shalt.err (!%p3573_p0)
}
  0x32   : > { %s4736_s26 = smov 128   ;;  %s4738_s2 = smov 8  }
  0x33   : > { %s4791_s25 = sld [smem:[#allocation32_spill]]  ;;  %s167_s22 = ssub.s32 %s3957_s30, %s4140_s24 }
  0x34   : > { %s170_s21 = sadd.s32 1, %s3953_s29  ;;  %p168_p2 = scmp.eq.s32.totalorder %s167_s22, 0 }
  0x35   : > { %p177_p5 = scmp.ne.s32.totalorder %s3953_s29, %s3949_s28  ;;  %p178_p8 = scmp.eq.s32.totalorder %s3957_s30, 0 }
  0x36   : > { %p183_p9 = scmp.ne.s32.totalorder %s3949_s28, %s3945_s3  ;;  %p3362_p12 = scmp.lt.s32.totalorder %s3957_s30, 2 }
  0x37   : > { %s4167_s19 = scalar_select %p168_p2, %s3953_s29, %s170_s21  }
  0x38   : > { %p179_p10 = por %p178_p8, %p177_p5  ;;  %p4171_p11 = por %p4743_p1, %p183_p9 }
  0x39   : > { %3319 = dma.hbm_to_vmem [thread:$0]  (!%p4135_p6), %s4791_s25, 256, %s598_s0, [#allocation4], %s4736_s26, %s4736_s26, %s4738_s2  }
  0x3a   : > { %4792 = sst [smem:[#allocation31_spill]] %s4167_s19  ;;  %s702_s16 = sand.u32 1, %s3957_s30  }
  0x3b   : > { %s4793_s17 = scalar_select %p4171_p11, 1, 0 }
  0x3c   : > { %s4178_s15 = sand.u32 1, %s3953_s29   ;;  %p4181_p13 = pnand %p3362_p12, %p179_p10 }
  0x3d   : > { %s3268_s0 = smul.u32 192, %s4178_s15  ;;  %s4795_s4 = sld [smem:[#allocation38_spill]] }
  0x3e   : > { %s4794_s27 = scalar_select %p4181_p13, 1, 0 }
  0x3f   : > { %s3269_s22 = smul.u32 3072, %s3957_s30  ;;  %s706_s26 = scalar_lea.vmem [#allocation14], %s3268_s0 }
  0x40   : > { %s713_s2 = sshll.u32 %s706_s26, 4  ;;  %s4193_s19 = scalar_lea.sflag [#allocation4], %s702_s16  ;;  %s4191_s2 = int_to_ptr.vmem [resolvable:$true] %s713_s2 }
  0x41   : > { %p4199_p2 = pneg %p4181_p13 }
  0x43   : > { %s4189_s25 = scalar_lea.hbm %s4795_s4, %s3269_s22  ;;  %s3582_s0 = scalar_lea.hbm %s4795_s4, 6144 }
  0x44   : > { %s3577_s29 = scalar_lea.hbm %s4189_s25, 3072  ;;  %p3583_p9 = scmp.lt.s32.totalorder %s4189_s25, %s4795_s4 }
  0x45   : > { %p3578_p0 = scmp.ne.s32.totalorder %s4189_s25, %s3577_s29  ;;  %p3584_p10 = scmp.lt.s32.totalorder %s3582_s0, %s3577_s29 }
  0x46   : > { %s4796_s24 = scalar_select %p4199_p2, 1, 0 }
  0x47   : > { %p3580_p5 = pnand %p4199_p2, %p3578_p0  ;;  %p3585_p12 = por %p3584_p10, %p3583_p9 }
  0x49   : > { %p3581_p8 = pneg %p3580_p5 }
  0x4b   : > { %p3586_p3 = pnand %p3585_p12, %p3581_p8 }
  0x4d   : > { %3589 = shalt.err (!%p3586_p3)
}
  0x4e   : > { %s3590_s16 = scalar_lea.vmem %s4191_s2, 3072  ;;  %s3962_s13 = smov [#allocation14]  }
  0x4f   : > { %p3591_p1 = scmp.ne.s32.totalorder %s4191_s2, %s3590_s16  ;;  %s3595_s22 = sshll.u32 %s3962_s13, 4  ;;  %s3596_s22 = int_to_ptr.vmem [resolvable:$false] %s3595_s22 }
  0x50   : > { %s3597_s21 = scalar_lea.vmem %s3596_s22, 6144  ;;  %p3598_p11 = scmp.lt.s32.totalorder %s4191_s2, %s3596_s22 }
  0x51   : > { %p3593_p0 = pnand %p3591_p1, %p4199_p2  ;;  %p3599_p4 = scmp.lt.s32.totalorder %s3597_s21, %s3590_s16 }
  0x53   : > { %p3594_p5 = pneg %p3593_p0  ;;  %p3600_p6 = por %p3599_p4, %p3598_p11 }
  0x55   : > { %p3601_p7 = pnand %p3600_p6, %p3594_p5 }
  0x57   : > { %3604 = shalt.err (!%p3601_p7)
}
  0x58   : > { %s3963_s29 = smov 192   ;;  %s3964_s0 = smov 12  }
  0x59   : > { %3344 = dma.hbm_to_vmem [thread:$0]  (!%p4181_p13), %s4189_s25, 3072, %s4191_s2, %s4193_s19, %s3963_s29, %s3963_s29, %s3964_s0  }
  0x5a   : > { %s3965_s26 = smov [#allocation6]   ;;  %s3966_s4 = smov [#allocation9]  }
  0x5b   : > { %s611_s3 = sshll.u32 %s3965_s26, 4  ;;  %s634_s13 = sshll.u32 %s3966_s4, 4  ;;  %s612_s3 = int_to_ptr.vmem [resolvable:$true] %s611_s3  ;;  %s635_s13 = int_to_ptr.vmem [resolvable:$true] %s634_s13 }
  0x5c   : > { %s3616_s22 = scalar_lea.vmem %s612_s3, 32  ;;  %p4797_p3 = scmp.ne.s32.totalorder %s4790_s6, 0 }
  0x5d   : > { %p3617_p1 = scmp.ne.s32.totalorder %s612_s3, %s3616_s22  ;;  %p3624_p7 = scmp.lt.s32.totalorder %s612_s3, %s612_s3 }
  0x5e   : > { %p3625_p11 = scmp.lt.s32.totalorder %s3616_s22, %s3616_s22 }
  0x5f   : > { %p3619_p4 = pnand %p3617_p1, %p4797_p3 }
  0x60   : > { %p3626_p8 = por %p3625_p11, %p3624_p7 }
  0x61   : > { %p3620_p6 = pneg %p3619_p4 }
  0x63   : > { %p3627_p9 = pnand %p3626_p8, %p3620_p6 }
  0x65   : > { %3630 = shalt.err (!%p3627_p9)
}
  0x66   : > { %p4798_p10 = scmp.ne.s32.totalorder %s4788_s5, 0  ;;  %s4799_s25 = sld [smem:[#allocation33_spill]] }
  0x67   : > { %s3642_s4 = scalar_lea.vmem %s635_s13, 512  ;;  %p3650_p13 = scmp.lt.s32.totalorder %s635_s13, %s635_s13 }
  0x68   : > { %p3643_p12 = scmp.ne.s32.totalorder %s635_s13, %s3642_s4  ;;  %p3651_p1 = scmp.lt.s32.totalorder %s3642_s4, %s3642_s4 }
  0x6a   : > { %p3645_p0 = pnand %p3643_p12, %p4797_p3  ;;  %p3652_p4 = por %p3651_p1, %p3650_p13 }
  0x6c   : > { %3322 = dma.hbm_to_vmem [thread:$0]  (!%p4798_p10), %s4799_s25, 32, %s612_s3, [#allocation7]  }
  0x6d   : > { %p3646_p5 = pneg %p3645_p0 }
  0x6f   : > { %p3653_p2 = pnand %p3652_p4, %p3646_p5 }
  0x71   : > { %3656 = shalt.err (!%p3653_p2)
}
  0x72   : > { %s4800_s21 = smov 8   ;;  %s4801_s29 = smov 128  }
  0x73   : > { %s4802_s22 = sld [smem:[#allocation35_spill]]  ;;  %s2907_s3 = sshll.u32 %s4178_s15, 6 }
  0x74   : > { %s3031_s16 = sshll.u32 %s3957_s30, 10  ;;  %s4803_s8 = sld [smem:[#allocation40_spill]] }
  0x75   : > { %s734_s7 = scalar_lea.vmem [#allocation15], %s2907_s3  ;;  %s3967_s10 = smov [#allocation8]  }
  0x76   : > { %s741_s11 = sshll.u32 %s734_s7, 4  ;;  %s4248_s0 = sshll.u32 %s3967_s10, 4  ;;  %s4246_s11 = int_to_ptr.vmem [resolvable:$true] %s741_s11  ;;  %s622_s0 = int_to_ptr.vmem [resolvable:$true] %s4248_s0 }
  0x77   : > { %p4804_p2 = scmp.ne.s32.totalorder %s4796_s24, 0 }
  0x79   : > { %3328 = dma.hbm_to_vmem [thread:$0]  (!%p4798_p10), %s4802_s22, 512, %s635_s13, [#allocation10], %s4801_s29, %s4801_s29, %s4800_s21  }
  0x7a   : > { %s4244_s4 = scalar_lea.hbm %s4803_s8, %s3031_s16  ;;  %s3662_s16 = scalar_lea.hbm %s4803_s8, 2048 }
  0x7b   : > { %s3657_s26 = scalar_lea.hbm %s4244_s4, 1024  ;;  %p3663_p11 = scmp.lt.s32.totalorder %s4244_s4, %s4803_s8 }
  0x7c   : > { %p3658_p13 = scmp.ne.s32.totalorder %s4244_s4, %s3657_s26  ;;  %p3664_p8 = scmp.lt.s32.totalorder %s3662_s16, %s3657_s26 }
  0x7e   : > { %p3660_p6 = pnand %p3658_p13, %p4804_p2  ;;  %p3665_p9 = por %p3664_p8, %p3663_p11 }
  0x80   : > { %p3661_p7 = pneg %p3660_p6 }
  0x82   : > { %p3666_p12 = pnand %p3665_p9, %p3661_p7 }
  0x84   : > { %3669 = shalt.err (!%p3666_p12)
}
  0x85   : > { %s3670_s7 = scalar_lea.vmem %s4246_s11, 1024  ;;  %s3968_s10 = smov [#allocation15]  }
  0x86   : > { %p3671_p0 = scmp.ne.s32.totalorder %s4246_s11, %s3670_s7  ;;  %s3675_s3 = sshll.u32 %s3968_s10, 4  ;;  %s3676_s3 = int_to_ptr.vmem [resolvable:$false] %s3675_s3 }
  0x87   : > { %s3677_s13 = scalar_lea.vmem %s3676_s3, 2048  ;;  %p3678_p4 = scmp.lt.s32.totalorder %s4246_s11, %s3676_s3 }
  0x88   : > { %p3673_p5 = pnand %p3671_p0, %p4804_p2  ;;  %p3679_p13 = scmp.lt.s32.totalorder %s3677_s13, %s3670_s7 }
  0x8a   : > { %p3674_p1 = pneg %p3673_p5  ;;  %p3680_p6 = por %p3679_p13, %p3678_p4 }
  0x8c   : > { %p3681_p10 = pnand %p3680_p6, %p3674_p1 }
  0x8e   : > { %3684 = shalt.err (!%p3681_p10)
}
  0x8f   : > { %s4756_s26 = smov 64   ;;  %s4760_s22 = smov 4  }
  0x90   : > { %p4805_p7 = scmp.ne.s32.totalorder %s4794_s27, 0  ;;  %s3696_s16 = scalar_lea.vmem %s622_s0, 512 }
  0x91   : > { %p3697_p11 = scmp.ne.s32.totalorder %s622_s0, %s3696_s16  ;;  %p3704_p10 = scmp.lt.s32.totalorder %s622_s0, %s622_s0 }
  0x92   : > { %3347 = dma.hbm_to_vmem [thread:$0]  (!%p4805_p7), %s4244_s4, 1024, %s4246_s11, %s4193_s19, %s4756_s26, %s4756_s26, %s4760_s22  }
  0x93   : > { %p3699_p8 = pnand %p3697_p11, %p4797_p3  ;;  %p3705_p12 = scmp.lt.s32.totalorder %s3696_s16, %s3696_s16 }
  0x95   : > { %p3700_p9 = pneg %p3699_p8  ;;  %p3706_p0 = por %p3705_p12, %p3704_p10 }
  0x97   : > { %p3707_p5 = pnand %p3706_p0, %p3700_p9 }
  0x99   : > { %3710 = shalt.err (!%p3707_p5)
}
  0x9a   : > { %p4806_p1 = scmp.ne.s32.totalorder %s4788_s5, 0  ;;  %s4807_s7 = sld [smem:[#allocation34_spill]] }
  0x9b   : > { %s3971_s11 = smov [#allocation11]   ;;  %s4758_s10 = sshll.u32 %s4178_s15, 7 }
  0x9c   : > { %s648_s4 = sshll.u32 %s3971_s11, 4  ;;  %s649_s4 = int_to_ptr.vmem [resolvable:$true] %s648_s4 }
  0x9d   : > { %s3722_s3 = scalar_lea.vmem %s649_s4, 16  ;;  %s3729_s13 = scalar_lea.vmem %s649_s4, 32 }
  0x9e   : > { %p3723_p4 = scmp.ne.s32.totalorder %s649_s4, %s3722_s3  ;;  %p3730_p11 = scmp.lt.s32.totalorder %s649_s4, %s649_s4 }
  0x9f   : > { %p3731_p8 = scmp.lt.s32.totalorder %s3729_s13, %s3722_s3 }
  0xa0   : > { %3325 = dma.hbm_to_vmem [thread:$0]  (!%p4806_p1), %s4807_s7, 512, %s622_s0, [#allocation7], %s4801_s29, %s4801_s29, %s4800_s21  }
  0xa1   : > { %p3725_p13 = pnand %p3723_p4, %p4797_p3  ;;  %p3732_p9 = por %p3731_p8, %p3730_p11 }
  0xa3   : > { %p3726_p6 = pneg %p3725_p13 }
  0xa5   : > { %p3733_p10 = pnand %p3732_p9, %p3726_p6 }
  0xa7   : > { %3736 = shalt.err (!%p3733_p10)
}
  0xa8   : > { %s4808_s0 = sld [smem:[#allocation36_spill]]  ;;  %s4759_s25 = sshll.u32 %s3957_s30, 11 }
  0xa9   : > { %s773_s7 = scalar_lea.vmem [#allocation16], %s4758_s10  ;;  %s4809_s12 = sld [smem:[#allocation43_spill]] }
  0xaa   : > { %s780_s11 = sshll.u32 %s773_s7, 4  ;;  %s781_s11 = int_to_ptr.vmem [resolvable:$true] %s780_s11 }
  0xae   : > { %3331 = dma.hbm_to_vmem [thread:$0]  (!%p4806_p1), %s4808_s0, 16, %s649_s4, [#allocation10]  }
  0xaf   : > { %s4301_s13 = scalar_lea.hbm %s4809_s12, %s4759_s25  ;;  %s3742_s0 = scalar_lea.hbm %s4809_s12, 4096 }
  0xb0   : > { %s3737_s16 = scalar_lea.hbm %s4301_s13, 2048  ;;  %p3743_p4 = scmp.lt.s32.totalorder %s4301_s13, %s4809_s12 }
  0xb1   : > { %p3738_p12 = scmp.ne.s32.totalorder %s4301_s13, %s3737_s16  ;;  %p3744_p13 = scmp.lt.s32.totalorder %s3742_s0, %s3737_s16 }
  0xb3   : > { %p3740_p0 = pnand %p3738_p12, %p4804_p2  ;;  %p3745_p6 = por %p3744_p13, %p3743_p4 }
  0xb5   : > { %p3741_p5 = pneg %p3740_p0 }
  0xb7   : > { %p3746_p11 = pnand %p3745_p6, %p3741_p5 }
  0xb9   : > { %3749 = shalt.err (!%p3746_p11)
}
  0xba   : > { %s3750_s26 = scalar_lea.vmem %s781_s11, 2048  ;;  %s3972_s3 = smov [#allocation16]  }
  0xbb   : > { %p3751_p8 = scmp.ne.s32.totalorder %s781_s11, %s3750_s26  ;;  %s3755_s25 = sshll.u32 %s3972_s3, 4  ;;  %s3756_s25 = int_to_ptr.vmem [resolvable:$false] %s3755_s25 }
  0xbc   : > { %s3757_s22 = scalar_lea.vmem %s3756_s25, 4096  ;;  %p3758_p12 = scmp.lt.s32.totalorder %s781_s11, %s3756_s25 }
  0xbd   : > { %p3753_p9 = pnand %p3751_p8, %p4804_p2  ;;  %p3759_p0 = scmp.lt.s32.totalorder %s3757_s22, %s3750_s26 }
  0xbf   : > { %p3754_p10 = pneg %p3753_p9  ;;  %p3760_p1 = por %p3759_p0, %p3758_p12 }
  0xc1   : > { %p3761_p3 = pnand %p3760_p1, %p3754_p10 }
  0xc3   : > { %3764 = shalt.err (!%p3761_p3)
}
  0xc4   : > { %3350 = dma.hbm_to_vmem [thread:$0]  (!%p4805_p7), %s4301_s13, 2048, %s781_s11, %s4193_s19, %s4801_s29, %s4801_s29, %s4800_s21  }
  0xc5   : > { %s3973_s10 = smov [#allocation12]   ;;  %s3974_s4 = smov [#allocation18]  }
  0xc6   : > { %s659_s16 = sshll.u32 %s3973_s10, 4  ;;  %s669_s2 = sshll.u32 %s3974_s4, 4  ;;  %s660_s16 = int_to_ptr.vmem [resolvable:$true] %s659_s16  ;;  %s670_s2 = int_to_ptr.vmem [resolvable:$true] %s669_s2 }
  0xc7   : > { %s3776_s25 = scalar_lea.vmem %s660_s16, 16  ;;  %p4810_p4 = scmp.ne.s32.totalorder %s4790_s6, 0 }
  0xc8   : > { %p3777_p5 = scmp.ne.s32.totalorder %s660_s16, %s3776_s25  ;;  %s3783_s22 = scalar_lea.vmem %s660_s16, 32 }
  0xc9   : > { %p3784_p13 = scmp.lt.s32.totalorder %s660_s16, %s660_s16  ;;  %p3785_p6 = scmp.lt.s32.totalorder %s3783_s22, %s3776_s25 }
  0xca   : > { %p3779_p1 = pnand %p3777_p5, %p4810_p4 }
  0xcb   : > { %p3786_p11 = por %p3785_p6, %p3784_p13 }
  0xcc   : > { %p3780_p3 = pneg %p3779_p1 }
  0xce   : > { %p3787_p8 = pnand %p3786_p11, %p3780_p3 }
  0xd0   : > { %3790 = shalt.err (!%p3787_p8)
}
  0xd1   : > { %p4811_p9 = scmp.ne.s32.totalorder %s4788_s5, 0  ;;  %s4812_s11 = sld [smem:[#allocation37_spill]] }
  0xd2   : > { %s3802_s13 = scalar_lea.vmem %s670_s2, 1024  ;;  %p3810_p5 = scmp.lt.s32.totalorder %s670_s2, %s670_s2 }
  0xd3   : > { %p3803_p10 = scmp.ne.s32.totalorder %s670_s2, %s3802_s13  ;;  %p3811_p1 = scmp.lt.s32.totalorder %s3802_s13, %s3802_s13 }
  0xd5   : > { %p3805_p12 = pnand %p3803_p10, %p4810_p4  ;;  %p3812_p7 = por %p3811_p1, %p3810_p5 }
  0xd7   : > { %3334 = dma.hbm_to_vmem [thread:$0]  (!%p4811_p9), %s4812_s11, 16, %s660_s16, [#allocation13]  }
  0xd8   : > { %p3806_p0 = pneg %p3805_p12 }
  0xda   : > { %p3813_p2 = pnand %p3812_p7, %p3806_p0 }
  0xdc   : > { %3816 = shalt.err (!%p3813_p2)
}
  0xdd   : > { %s4813_s0 = smov 4   ;;  %s4814_s7 = smov 64  }
  0xde   : > { %3337 = dma.hbm_to_vmem [thread:$0]  (!%p4811_p9), %s4730_s18, 1024, %s670_s2, [#allocation7], %s4814_s7, %s4814_s7, %s4813_s0  }
  0xdf   : > { %s3975_s10 = smov [#allocation19]   ;;  %s4815_s4 = sshll.u32 %s3957_s30, 11 }
  0xe0   : > { %s685_s16 = sshll.u32 %s3975_s10, 4  ;;  %s4816_s14 = sld [smem:[#allocation45_spill]]  ;;  %s686_s16 = int_to_ptr.vmem [resolvable:$true] %s685_s16 }
  0xe1   : > { %s4817_s29 = sshll.u32 %s4178_s15, 7  ;;  %s3828_s8 = scalar_lea.vmem %s686_s16, 1024 }
  0xe2   : > { %s801_s11 = scalar_lea.vmem [#allocation17], %s4817_s29  ;;  %p3829_p2 = scmp.ne.s32.totalorder %s686_s16, %s3828_s8 }
  0xe3   : > { %s808_s13 = sshll.u32 %s801_s11, 4  ;;  %p3836_p13 = scmp.lt.s32.totalorder %s686_s16, %s686_s16  ;;  %s809_s13 = int_to_ptr.vmem [resolvable:$true] %s808_s13 }
  0xe4   : > { %p3831_p7 = pnand %p3829_p2, %p4810_p4  ;;  %p3837_p6 = scmp.lt.s32.totalorder %s3828_s8, %s3828_s8 }
  0xe6   : > { %s4345_s21 = scalar_lea.hbm %s4816_s14, %s4815_s4  ;;  %p3832_p3 = pneg %p3831_p7 }
  0xe7   : > { %p3838_p11 = por %p3837_p6, %p3836_p13 }
  0xe9   : > { %p3839_p8 = pnand %p3838_p11, %p3832_p3 }
  0xeb   : > { %3842 = shalt.err (!%p3839_p8)
}
  0xec   : > { %3340 = dma.hbm_to_vmem [thread:$0]  (!%p4811_p9), %s4732_s20, 1024, %s686_s16, [#allocation10], %s4814_s7, %s4814_s7, %s4813_s0  }
  0xed   : > { %s3843_s15 = scalar_lea.hbm %s4345_s21, 2048  ;;  %p4818_p10 = scmp.ne.s32.totalorder %s4796_s24, 0 }
  0xee   : > { %p3844_p4 = scmp.ne.s32.totalorder %s4345_s21, %s3843_s15  ;;  %s3848_s5 = scalar_lea.hbm %s4816_s14, 4096 }
  0xef   : > { %p3849_p5 = scmp.lt.s32.totalorder %s4345_s21, %s4816_s14  ;;  %p3850_p1 = scmp.lt.s32.totalorder %s3848_s5, %s3843_s15 }
  0xf0   : > { %p3846_p12 = pnand %p3844_p4, %p4818_p10 }
  0xf1   : > { %p3851_p2 = por %p3850_p1, %p3849_p5 }
  0xf2   : > { %p3847_p0 = pneg %p3846_p12 }
  0xf4   : > { %p3852_p7 = pnand %p3851_p2, %p3847_p0 }
  0xf6   : > { %3855 = shalt.err (!%p3852_p7)
}
  0xf7   : > { %s3856_s10 = scalar_lea.vmem %s809_s13, 2048  ;;  %s3976_s16 = smov [#allocation17]  }
  0xf8   : > { %p3857_p9 = scmp.ne.s32.totalorder %s809_s13, %s3856_s10  ;;  %s3861_s4 = sshll.u32 %s3976_s16, 4  ;;  %s3862_s4 = int_to_ptr.vmem [resolvable:$false] %s3861_s4 }
  0xf9   : > { %s3863_s25 = scalar_lea.vmem %s3862_s4, 4096  ;;  %p3864_p6 = scmp.lt.s32.totalorder %s809_s13, %s3862_s4 }
  0xfa   : > { %p3859_p3 = pnand %p3857_p9, %p4818_p10  ;;  %p3865_p11 = scmp.lt.s32.totalorder %s3863_s25, %s3856_s10 }
  0xfc   : > { %p3860_p13 = pneg %p3859_p3  ;;  %p3866_p8 = por %p3865_p11, %p3864_p6 }
  0xfe   : > { %p3867_p4 = pnand %p3866_p8, %p3860_p13 }
 0x100   : > { %3870 = shalt.err (!%p3867_p4)
}
 0x101   : > { %p4819_p12 = scmp.ne.s32.totalorder %s4794_s27, 0  ;;  %p4820_p10 = scmp.ne.s32.totalorder %s4787_s1, 0 }
 0x102   : > { %p4821_p0 = scmp.eq.s32.totalorder (!%p4820_p10), %s4121_s23, 0 }
 0x103   : > { %3353 = dma.hbm_to_vmem [thread:$0]  (!%p4819_p12), %s4345_s21, 2048, %s809_s13, %s4193_s19, %s4814_s7, %s4814_s7, %s4813_s0  }
 0x104   : > { %838 = sbr.rel (%p4820_p10) target bundleno = 3547 (0xddb), region = 108 }
 0x109   : > { %3912 = dma.done.wait (%p4821_p0), [#allocation4], 256   ;;  %p4822_p5 = pmov %p4821_p0 }
 0x10a   : > { %p4823_p1 = pmov %p4821_p0 }
 0x10b   : > { %3914 = vsyncadd (%p4822_p5), [#allocation4], 4294967040 }
 0x10c   : > { %3916 = dma.done.wait (%p4823_p1), [#allocation7], 544   ;;  %p4824_p2 = pmov %p4821_p0 }
 0x10d   : > { %p4825_p7 = pmov %p4821_p0 }
 0x10e   : > { %3918 = vsyncadd (%p4824_p2), [#allocation7], 4294966752 }
 0x10f   : > { %3920 = dma.done.wait (%p4825_p7), [#allocation10], 528   ;;  %p4826_p9 = pmov %p4821_p0 }
 0x110   : > { %p4827_p3 = pmov %p4821_p0 }
 0x111   : > { %3922 = vsyncadd (%p4826_p9), [#allocation10], 4294966768 }
 0x112   : > { %3924 = dma.done.wait (%p4827_p3), [#allocation13], 16   ;;  %p4828_p13 = pmov %p4821_p0 }
 0x113   : > { %s864_s19 = sand.u32 1, %s4121_s23   ;;  %s866_s1 = sand.u32 1, %s3949_s28  }
 0x114   : > { %3926 = vsyncadd (%p4828_p13), [#allocation13], 4294967280  ;;  %s3270_s24 = smul.u32 192, %s866_s1  ;;  %s865_s27 = scalar_lea.sflag [#allocation4], %s864_s19 }
 0x115   : > { %p4829_p6 = scmp.ne.s32.totalorder %s4793_s17, 0 }
 0x116   : > { %s4399_s0 = scalar_lea.vmem [#allocation14], %s3270_s24 }
 0x117   : > { %3928 = dma.done.wait (%p4829_p6), %s865_s27, 8192  }
 0x118   : > { %3930 = vsyncadd (%p4829_p6), %s865_s27, 4294959104  ;;  %s2923_s7 = sshll.u32 %s866_s1, 6  ;;  %s2924_s22 = sshll.u32 %s866_s1, 7 }
 0x119   : > { %s4405_s21 = scalar_lea.vmem [#allocation15], %s2923_s7  ;;  %s4407_s29 = scalar_lea.vmem [#allocation16], %s2924_s22 }
 0x11a   : > { %s4409_s11 = scalar_lea.vmem [#allocation17], %s2924_s22  ;;  %p4830_p11 = pmov %p4821_p0 }
 0x11b   : > { %p4831_p8 = pmov %p4821_p0 }
 0x11c   : > { %3932 = dma.done.wait (%p4830_p11), [#allocation7], 1024  }
 0x11d   : > { %3934 = vsyncadd (%p4831_p8), [#allocation7], 4294966272  ;;  %p4832_p4 = pmov %p4821_p0 }
 0x11e   : > { %p4833_p12 = pmov %p4821_p0 }
 0x11f   : > { %3936 = dma.done.wait (%p4832_p4), [#allocation10], 1024  }
 0x120   : > { %3938 = vsyncadd (%p4833_p12), [#allocation10], 4294966272  ;;  %p1000_p10 = scmp.lt.s32.totalorder %s4121_s23, 1  ;;  %s4836_s1 = sld [smem:[#allocation39_spill]] }
 0x121   : > { %s4837_s12 = sld [smem:[#allocation44_spill]]  ;;  %p4841_p0 = scmp.ne.s32.totalorder %s4121_s23, 0 }
 0x122   : > { %s4421_s17 = scalar_select %p1000_p10, %s4121_s23, 1 }
 0x123   : > { %s4838_s15 = sld [smem:[#allocation46_spill]] }
 0x124   : > { %s3271_s13 = smul.u32 3, %s4421_s17  ;;  %s2928_s27 = sshll.u32 %s4421_s17, 1 }
 0x125   : > { %s4839_s26 = sld [smem:[#allocation47_spill]] }
 0x126   : > { %s4439_s24 = scalar_lea.vmem %s4836_s1, %s3271_s13  ;;  %s4840_s4 = sld [smem:[#allocation48_spill]] }
 0x127   : > { %s4445_s14 = scalar_lea.vmem %s4837_s12, %s2928_s27 }
 0x128   : > { %1030 = sbr.rel (%p4841_p0) target bundleno = 613 (0x265), region = 160 }
 0x129   : > { %s1019_s8 = scalar_lea.vmem %s4838_s15, %s4421_s17 }
 0x12b   : > { %s1022_s3 = scalar_lea.vmem %s4839_s26, %s4421_s17 }
 0x12c   : > { %s1025_s25 = scalar_lea.vmem %s4840_s4, %s4421_s17 }
 0x12d   : > { %v1031_v0 = vld [vmem:[#allocation3] sm:$0xff]  ;;  %v1032_v1 = vld [vmem:[#allocation3 + $0x8] sm:$0xff]  ;;  %v2930_v17 = vld [vmem:[#allocation11] ss:$0 sm:$0xff] }
 0x12e   : > { %1035 = vadd.xlane.f32.xlu0 %v1031_v0  ;;  %v2931_v19 = vld [vmem:[#allocation12] ss:$0 sm:$0xff] }
 0x132   : > { %1037 = vadd.xlane.f32.xlu0 %v1032_v1 }
 0x1b7   : > { %v1036_v2 = vpop.xlane.xlu0 %1035 }
 0x1b8   : > { %v1040_v3 = vmul.f32 0.0078125, %v1036_v2 }
 0x1ba   : > { %v1042_v4 = vsub.f32 %v1031_v0, %v1040_v3 }
 0x1bb   : > { %v1038_v5 = vpop.xlane.xlu0 %1037 }
 0x1bc   : > { %v1041_v6 = vmul.f32 0.0078125, %v1038_v5  ;;  %v1044_v7 = vmul.f32 %v1042_v4, %v1042_v4 }
 0x1be   : > { %v1043_v8 = vsub.f32 %v1032_v1, %v1041_v6  ;;  %1046 = vadd.xlane.f32.xlu1 %v1044_v7 }
 0x1c0   : > { %v1045_v9 = vmul.f32 %v1043_v8, %v1043_v8 }
 0x1c2   : > { %1048 = vadd.xlane.f32.xlu1 %v1045_v9 }
 0x247   : > { %v1047_v10 = vpop.xlane.xlu1 %1046 }
 0x248   : > { %v1050_v11 = vmul.f32 0.0078125, %v1047_v10 }
 0x24a   : > { %v1052_v12 = vadd.f32 1e-12, %v1050_v11 }
 0x24b   : > { %v1049_v13 = vpop.xlane.xlu1 %1048 }
 0x24c   : > { %3427 = vrsqrt.f32 %v1052_v12  ;;  %v1051_v14 = vmul.f32 0.0078125, %v1049_v13 }
 0x24e   : > { %v1053_v15 = vadd.f32 1e-12, %v1051_v14 }
 0x250   : > { %3429 = vrsqrt.f32 %v1053_v15 }
 0x259   : > { %v3428_v16 = vpop.eup %3427 }
 0x25a   : > { %v1056_v18 = vmul.f32 %v3428_v16, %v1042_v4 }
 0x25c   : > { %v1064_v20 = vmul.f32 %v2930_v17, %v1056_v18 }
 0x25d   : > { %v3430_v21 = vpop.eup %3429 }
 0x25e   : > { %v1072_v22 = vadd.f32 %v2931_v19, %v1064_v20  ;;  %v1057_v23 = vmul.f32 %v3430_v21, %v1043_v8 }
 0x260   : > { %1074 = vst [vmem:[#allocation2] sm:$0xff] %v1072_v22  ;;  %v1065_v24 = vmul.f32 %v2930_v17, %v1057_v23 }
 0x262   : > { %v1073_v25 = vadd.f32 %v2931_v19, %v1065_v24 }
 0x264   : > { %1075 = vst [vmem:[#allocation2 + $0x8] sm:$0xff] %v1073_v25 }
 0x265 PF: > { %v3431_v26 = vld [vmem:[%s4399_s0 + $0xac] ss:$12 sps:$4 sm:$0xff]   ;;  %v3433_v27 = vld [vmem:[%s4399_s0 + $0xa8] ss:$12 sps:$4 sm:$0xff]   ;;  %v3977_v28 = vmov 0   ;;  %v3978_v29 = vmov 0.0   ;;  %v1113_v55 = vlaneseq  ;;  %s4842_s13 = scalar_lea.vmem %s4721_s9, %s4421_s17 }
 0x266   : > { %1288 = vmatprep.mubr.bf16.mxu0 %v3977_v28  ;;  %3122 = vmatprep.subr.bf16.mxu1 %v3978_v29  ;;  %v3434_v30 = vld [vmem:[%s4399_s0 + $0x94] ss:$12 sps:$4 sm:$0xff]   ;;  %v3436_v31 = vld [vmem:[%s4399_s0 + $0x90] ss:$12 sps:$4 sm:$0xff]   ;;  %v3439_v33 = vld [vmem:[%s4399_s0 + $0x78] ss:$12 sps:$4 sm:$0xff]  }
 0x267   : > { %1256 = vmatprep.subr.bf16.mxu0 %v3431_v26  ;;  %v3437_v32 = vld [vmem:[%s4399_s0 + $0x7c] ss:$12 sps:$4 sm:$0xff]   ;;  %v3440_v34 = vld [vmem:[%s4399_s0 + $0x64] ss:$12 sps:$4 sm:$0xff]   ;;  %v3442_v35 = vld [vmem:[%s4399_s0 + $0x60] ss:$12 sps:$4 sm:$0xff]  }
 0x268   : > { %1257 = vmatpush1.bf16.msra.mxu0 %v3433_v27  ;;  %v3443_v36 = vld [vmem:[%s4399_s0 + $0x4c] ss:$12 sps:$4 sm:$0xff]   ;;  %v3455_v37 = vld [vmem:[%s4399_s0 + $0xb0] ss:$12 sps:$4 sm:$0xff]   ;;  %v3445_v39 = vld [vmem:[%s4399_s0 + $0x48] ss:$12 sps:$4 sm:$0xff]  }
 0x269   : > { %1258 = vmatprep.subr.bf16.mxu0 %v3434_v30  ;;  %3123 = vmatpush3.bf16.msra.mxu1 %v3455_v37  ;;  %v3456_v38 = vld [vmem:[%s4399_s0 + $0x98] ss:$12 sps:$4 sm:$0xff]   ;;  %v3446_v40 = vld [vmem:[%s4399_s0 + $0x34] ss:$12 sps:$4 sm:$0xff]   ;;  %v3448_v42 = vld [vmem:[%s4399_s0 + $0x30] ss:$12 sps:$4 sm:$0xff]  }
 0x26a   : > { %3124 = vmatprep.subr.bf16.mxu1 %v3978_v29  ;;  %v3457_v41 = vld [vmem:[%s4399_s0 + $0x80] ss:$12 sps:$4 sm:$0xff]   ;;  %v3449_v43 = vld [vmem:[%s4399_s0 + $0x1c] ss:$12 sps:$4 sm:$0xff]   ;;  %v3451_v45 = vld [vmem:[%s4399_s0 + $0x18] ss:$12 sps:$4 sm:$0xff]  }
 0x26b   : > { %v3458_v44 = vld [vmem:[%s4399_s0 + $0x68] ss:$12 sps:$4 sm:$0xff]   ;;  %v3452_v46 = vld [vmem:[%s4399_s0 + $0x4] ss:$12 sps:$4 sm:$0xff]   ;;  %v3454_v48 = vld [vmem:[%s4399_s0] ss:$12 sps:$4 sm:$0xff]  }
 0x26c   : > { %1259 = vmatpush1.bf16.msra.mxu0 %v3436_v31  ;;  %v3459_v47 = vld [vmem:[%s4399_s0 + $0x50] ss:$12 sps:$4 sm:$0xff]   ;;  %v4489_v50 = vld [vmem:[#allocation2 + $0x8] sm:$0xff]  ;;  %vm3979_vm0 = vmmov 0   ;;  %v4508_v56 = vshrl.u32 %v1113_v55, 7  ;;  %v4514_v62 = vld [vmem:[#allocation8 + $0x18] sm:$0xff] }
 0x26d   : > { %1260 = vmatprep.subr.bf16.mxu0 %v3437_v32  ;;  %3125 = vmatpush3.bf16.msra.mxu1 %v3456_v38  ;;  %v4487_v49 = vld [vmem:[#allocation2] sm:$0xff]  ;;  %v3462_v54 = vld [vmem:[%s4399_s0 + $0x8] ss:$12 sps:$4 sm:$0xff]   ;;  %v4517_v3 = vld [vmem:[#allocation8 + $0x10] sm:$0xff]  ;;  %vm1431_vm1 = vcmask 261120   ;;  %s4843_s26 = sld [smem:[#allocation41_spill]] }
 0x26e   : > { %3126 = vmatprep.subr.bf16.mxu1 %v3978_v29  ;;  %v3460_v51 = vld [vmem:[%s4399_s0 + $0x38] ss:$12 sps:$4 sm:$0xff]   ;;  %v1110_v52 = vpack.c.bf16 %v4489_v50, %v4487_v49  ;;  %v3461_v53 = vld [vmem:[%s4399_s0 + $0x20] ss:$12 sps:$4 sm:$0xff]   ;;  %3138 = vmatprep.mubr.msk.bf16.mxu1 %vm3979_vm0, %v3978_v29  ;;  %v1119_v57 = vsub.s32 1, %v4508_v56  ;;  %v1115_v8 = vsub.s32 0, %v4508_v56 }
 0x26f   : > { %v1111_v58 = vld [vmem:[%s4439_s24] sm:$0x7]  ;;  %v4522_v7 = vld [vmem:[#allocation8 + $0x8] sm:$0xff]  ;;  %v1123_v18 = vsub.s32 2, %v4508_v56  ;;  %v1346_v38 = vld [vmem:[#allocation9 + $0x10] sm:$0xff]  ;;  %s4845_s1 = sld [smem:[#allocation42_spill]] }
 0x270   : > { %1261 = vmatpush1.bf16.msra.mxu0 %v3439_v33  ;;  %v1120_v59 = vrot.slane %v1111_v58, %v1119_v57  ;;  %v4529_v11 = vld [vmem:[#allocation8] sm:$0xff]  ;;  %v1116_v12 = vrot.slane %v1111_v58, %v1115_v8  ;;  %v2956_v25 = vld [vmem:[#allocation6] ss:$0 sm:$0xff]  ;;  %v2959_v31 = vld [vmem:[#allocation6 + $0x1] ss:$0 sm:$0xff]  ;;  %p3008_p5 = scmp.ne.s32.totalorder %s4121_s23, 1 }
 0x271   : > { %1262 = vmatprep.subr.bf16.mxu0 %v3440_v34  ;;  %3127 = vmatpush3.bf16.msra.mxu1 %v3457_v41  ;;  %v1124_v20 = vrot.slane %v1111_v58, %v1123_v18  ;;  %v1347_v37 = vld [vmem:[#allocation9 + $0x18] sm:$0xff] }
 0x272   : > { %3128 = vmatprep.subr.bf16.mxu1 %v3978_v29 }
 0x274   : > { %1263 = vmatpush1.bf16.msra.mxu0 %v3442_v35 }
 0x275   : > { %1264 = vmatprep.subr.bf16.mxu0 %v3443_v36  ;;  %3129 = vmatpush3.bf16.msra.mxu1 %v3458_v44  ;;  %s4846_s24 = scalar_lea.vmem %s4845_s1, %s4421_s17 }
 0x276   : > { %3130 = vmatprep.subr.bf16.mxu1 %v3978_v29 }
 0x278   : > { %1265 = vmatpush1.bf16.msra.mxu0 %v3445_v39  ;;  %v1345_v39 = vld [vmem:[#allocation9 + $0x8] sm:$0xff] }
 0x279   : > { %1266 = vmatprep.subr.bf16.mxu0 %v3446_v40  ;;  %3131 = vmatpush3.bf16.msra.mxu1 %v3459_v47  ;;  %v1344_v40 = vld [vmem:[#allocation9] sm:$0xff] }
 0x27a   : > { %3132 = vmatprep.subr.bf16.mxu1 %v3978_v29 }
 0x27c   : > { %1267 = vmatpush1.bf16.msra.mxu0 %v3448_v42 }
 0x27d   : > { %1268 = vmatprep.subr.bf16.mxu0 %v3449_v43  ;;  %3133 = vmatpush3.bf16.msra.mxu1 %v3460_v51 }
 0x27e   : > { %3134 = vmatprep.subr.bf16.mxu1 %v3978_v29 }
 0x280   : > { %1269 = vmatpush1.bf16.msra.mxu0 %v3451_v45 }
 0x281   : > { %1270 = vmatprep.subr.bf16.mxu0 %v3452_v46  ;;  %3135 = vmatpush3.bf16.msra.mxu1 %v3461_v53 }
 0x282   : > { %3136 = vmatprep.subr.bf16.mxu1 %v3978_v29 }
 0x284   : > { %1271 = vmatpush1.bf16.msra.mxu0 %v3454_v48 }
 0x285   : > { %3175 = vmatprep.subr.mxu0 %v3978_v29  ;;  %3137 = vmatpush3.bf16.msra.mxu1 %v3462_v54 }
 0x286   : > { %3142 = vmatprep.subr.mxu1 %v3978_v29 }
 0x287   : > { %1289 = vmatmul.mubr.bf16.vlgmr.msra.gmra.mxu0 %v1110_v52 }
 0x288   : > { %3183 = vmatprep.mubr.msk.f32.mxu0 %vm3979_vm0, %v3978_v29  ;;  %3139 = vmatmul.mubr.bf16.vlgmr.msra.gmra.mxu1 %v1110_v52 }
 0x289   : > { %3150 = vmatprep.mubr.msk.f32.mxu1 %vm3979_vm0, %v3978_v29 }
 0x347   : > { %v1290_v60 = vpop.f32.mrf.mxu0 }
 0x348   : > { %v1291_v15 = vadd.f32 %v1290_v60, %v1116_v12  ;;  %v1333_v19 = vpop.f32.mrf.mxu1 }
 0x349   : > { %v1292_v61 = vpop.f32.mrf.mxu0  ;;  %v1334_v44 = vadd.f32 %v1333_v19, %v1124_v20 }
 0x34a   : > { %v1293_v63 = vadd.f32 %v1292_v61, %v1120_v59  ;;  %v3140_v21 = vpop.f32.mrf.mxu1 }
 0x34b   : > { %v1294_v0 = vpop.f32.mrf.mxu0  ;;  %v1355_v46 = vmul.f32 %v4514_v62, %v1334_v44  ;;  %v1354_v47 = vmul.f32 %v4517_v3, %v1334_v44  ;;  %v1353_v48 = vmul.f32 %v4522_v7, %v1334_v44  ;;  %v1352_v51 = vmul.f32 %v4529_v11, %v1334_v44  ;;  %v3483_v44 = vld [vmem:[%s4407_s29 + $0x30] ss:$8 sps:$4 sm:$0xff]  }
 0x34c   : > { %v1351_v1 = vmul.f32 %v4514_v62, %v1293_v63  ;;  %v1350_v5 = vmul.f32 %v4517_v3, %v1293_v63  ;;  %v1349_v9 = vmul.f32 %v4522_v7, %v1293_v63  ;;  %v1348_v13 = vmul.f32 %v4529_v11, %v1293_v63  ;;  %v1336_v22 = vpop.f32.mrf.mxu1 }
 0x34d   : > { %v1296_v2 = vpop.f32.mrf.mxu0  ;;  %v1295_v17 = vadd.f32 %v1294_v0, %v1116_v12  ;;  %v4546_v23 = vadd.f32 %v1336_v22, %v1124_v20 }
 0x34e   : > { %v1297_v4 = vadd.f32 %v1296_v2, %v1120_v59  ;;  %3143 = vmatpush3.xpose.msra.mxu1 %v1351_v1  ;;  %v3141_v24 = vpop.f32.mrf.mxu1  ;;  %v3463_v2 = vld [vmem:[%s4405_s21 + $0x38] sm:$0xff]  }
 0x34f   : > { %3144 = vmatprep.subr.mxu1 %v3978_v29  ;;  %v1593_v63 = vmul.f32 %v4514_v62, %v4546_v23  ;;  %v1592_v0 = vmul.f32 %v4517_v3, %v4546_v23  ;;  %v1590_v1 = vmul.f32 %v4529_v11, %v4546_v23 }
 0x350   : > { %v1589_v6 = vmul.f32 %v4514_v62, %v1297_v4  ;;  %v1588_v10 = vmul.f32 %v4517_v3, %v1297_v4  ;;  %v1587_v14 = vmul.f32 %v4522_v7, %v1297_v4  ;;  %v1586_v16 = vmul.f32 %v4529_v11, %v1297_v4  ;;  %v3464_v3 = vld [vmem:[%s4405_s21 + $0x30] sm:$0xff]   ;;  %v3465_v4 = vld [vmem:[%s4405_s21 + $0x28] sm:$0xff]  }
 0x351   : > { %v1591_v62 = vmul.f32 %v4522_v7, %v4546_v23  ;;  %v3468_v7 = vld [vmem:[%s4405_s21 + $0x10] sm:$0xff]  }
 0x352   : > { %3145 = vmatpush3.xpose.msra.mxu1 %v1350_v5  ;;  %3176 = vmatpush3.xpose.msra.mxu0 %v1589_v6  ;;  %v3466_v5 = vld [vmem:[%s4405_s21 + $0x20] sm:$0xff]   ;;  %v3467_v6 = vld [vmem:[%s4405_s21 + $0x18] sm:$0xff]  }
 0x353   : > { %3146 = vmatprep.subr.mxu1 %v3978_v29  ;;  %3177 = vmatprep.subr.mxu0 %v3978_v29 }
 0x356   : > { %3147 = vmatpush3.xpose.msra.mxu1 %v1349_v9  ;;  %3178 = vmatpush3.xpose.msra.mxu0 %v1588_v10  ;;  %v3469_v9 = vld [vmem:[%s4405_s21 + $0x8] sm:$0xff]  }
 0x357   : > { %3148 = vmatprep.subr.mxu1 %v3978_v29  ;;  %3179 = vmatprep.subr.mxu0 %v3978_v29 }
 0x35a   : > { %3149 = vmatpush3.xpose.msra.mxu1 %v1348_v13  ;;  %3180 = vmatpush3.xpose.msra.mxu0 %v1587_v14 }
 0x35b   : > { %3181 = vmatprep.subr.mxu0 %v3978_v29  ;;  %3153 = vmatprep.subr.mxu1 %v3978_v29 }
 0x35d   : > { %3151 = vmatmul.mubr.f32.vlgmr.msra.gmra.mxu1 %v1291_v15 }
 0x35e   : > { %3182 = vmatpush3.xpose.msra.mxu0 %v1586_v16  ;;  %3161 = vmatprep.mubr.msk.f32.mxu1 %vm3979_vm0, %v3978_v29  ;;  %v3470_v16 = vld [vmem:[%s4405_s21] sm:$0xff]  }
 0x35f   : > { %3208 = vmatprep.subr.bf16.mxu0 %v3978_v29  ;;  %3154 = vmatpush3.msra.mxu1 %v1347_v37 }
 0x360   : > { %3155 = vmatprep.subr.mxu1 %v3978_v29 }
 0x361   : > { %3184 = vmatmul.mubr.f32.vlgmr.msra.gmra.mxu0 %v1295_v17  ;;  %3156 = vmatpush3.msra.mxu1 %v1346_v38 }
 0x362   : > { %3224 = vmatprep.mubr.msk.bf16.mxu0 %vm3979_vm0, %v3978_v29  ;;  %3157 = vmatprep.subr.mxu1 %v3978_v29 }
 0x363   : > { %3158 = vmatpush3.msra.mxu1 %v1345_v39  ;;  %3209 = vmatpush3.bf16.msra.mxu0 %v3463_v2 }
 0x364   : > { %3159 = vmatprep.subr.mxu1 %v3978_v29  ;;  %3210 = vmatprep.subr.bf16.mxu0 %v3978_v29 }
 0x365   : > { %3160 = vmatpush3.msra.mxu1 %v1344_v40 }
 0x366   : > { %3164 = vmatprep.subr.mxu1 %v3978_v29 }
 0x367   : > { %3211 = vmatpush3.bf16.msra.mxu0 %v3464_v3  ;;  %v2972_v3 = vld [vmem:[%s4846_s24] ss:$0 sm:$0xff] }
 0x368   : > { %3212 = vmatprep.subr.bf16.mxu0 %v3978_v29 }
 0x36b   : > { %3213 = vmatpush3.bf16.msra.mxu0 %v3465_v4 }
 0x36c   : > { %3214 = vmatprep.subr.bf16.mxu0 %v3978_v29 }
 0x36f   : > { %3215 = vmatpush3.bf16.msra.mxu0 %v3466_v5 }
 0x370   : > { %3216 = vmatprep.subr.bf16.mxu0 %v3978_v29 }
 0x373   : > { %3217 = vmatpush3.bf16.msra.mxu0 %v3467_v6 }
 0x374   : > { %3218 = vmatprep.subr.bf16.mxu0 %v3978_v29 }
 0x377   : > { %3219 = vmatpush3.bf16.msra.mxu0 %v3468_v7 }
 0x378   : > { %3220 = vmatprep.subr.bf16.mxu0 %v3978_v29 }
 0x37b   : > { %3221 = vmatpush3.bf16.msra.mxu0 %v3469_v9  ;;  %v3495_v9 = vld [vmem:[%s4409_s11 + $0x78] sm:$0xff]  }
 0x37c   : > { %3222 = vmatprep.subr.bf16.mxu0 %v3978_v29 }
 0x37f   : > { %3223 = vmatpush3.bf16.msra.mxu0 %v3470_v16  ;;  %v3502_v16 = vld [vmem:[%s4409_s11 + $0x20] sm:$0xff]  }
 0x380   : > { %3082 = vmatprep.subr.bf16.mxu0 %v3495_v9 }
 0x41d   : > { %v1427_v26 = vpop.f32.mrf.mxu1 }
 0x41e   : > { %v1428_v27 = vadd.f32 %v2956_v25, %v1427_v26 }
 0x41f   : > { %v3152_v30 = vpop.f32.mrf.mxu1 }
 0x420   : > { %v1432_v32 = vsel %vm1431_vm1, %v1428_v27, -inf  ;;  %v3473_v30 = vld [vmem:[%s4407_s29 + $0x74] ss:$8 sps:$4 sm:$0xff]  }
 0x421   : > { %v1665_v33 = vpop.f32.mrf.mxu0  ;;  %1433 = vmax.xlane.f32.xlu0 %v1432_v32 }
 0x422   : > { %v1666_v34 = vadd.f32 %v2959_v31, %v1665_v33 }
 0x423   : > { %v3185_v35 = vpop.f32.mrf.mxu0 }
 0x424   : > { %v1669_v36 = vsel %vm1431_vm1, %v1666_v34, -inf }
 0x425   : > { %1670 = vmax.xlane.f32.xlu0 %v1669_v36 }
 0x4aa   : > { %v1434_v41 = vpop.xlane.xlu0 %1433 }
 0x4ab   : > { %v1435_v42 = vsub.f32 %v1428_v27, %v1434_v41  ;;  %v3471_v27 = vld [vmem:[%s4407_s29 + $0x70] ss:$8 sps:$4 sm:$0xff]   ;;  %v3480_v41 = vld [vmem:[%s4407_s29 + $0x40] ss:$8 sps:$4 sm:$0xff]  }
 0x4ad   : > { %v1436_v43 = vmul.f32 1.442695, %v1435_v42  ;;  %v3482_v42 = vld [vmem:[%s4407_s29 + $0x44] ss:$8 sps:$4 sm:$0xff]  }
 0x4ae   : > { %v1671_v52 = vpop.xlane.xlu0 %1670 }
 0x4af   : > { %3511 = vpow2.f32 %v1436_v43  ;;  %v1672_v55 = vsub.f32 %v1666_v34, %v1671_v52  ;;  %v3485_v43 = vld [vmem:[%s4407_s29 + $0x34] ss:$8 sps:$4 sm:$0xff]   ;;  %v3492_v52 = vld [vmem:[%s4407_s29] ss:$8 sps:$4 sm:$0xff]  }
 0x4b1   : > { %v1673_v58 = vmul.f32 1.442695, %v1672_v55 }
 0x4bc   : > { %v3512_v45 = vpop.eup %3511 }
 0x4bd   : > { %3162 = vmatmul.mubr.msk.f32.vlgmr.msra.gmra.mxu1 %vm1431_vm1, %v3512_v45 }
 0x4be   : > { %3165 = vmatpush3.msra.mxu1 %v1355_v46  ;;  %3172 = vmatprep.mubr.msk.f32.mxu1 %vm3979_vm0, %v3978_v29  ;;  %v3486_v46 = vld [vmem:[%s4407_s29 + $0x20] ss:$8 sps:$4 sm:$0xff]  }
 0x4bf   : > { %3166 = vmatprep.subr.mxu1 %v3978_v29 }
 0x4c0   : > { %3167 = vmatpush3.msra.mxu1 %v1354_v47  ;;  %v3491_v47 = vld [vmem:[%s4407_s29 + $0x14] ss:$8 sps:$4 sm:$0xff]  }
 0x4c1   : > { %3168 = vmatprep.subr.mxu1 %v3978_v29 }
 0x4c2   : > { %3169 = vmatpush3.msra.mxu1 %v1353_v48  ;;  %v3489_v48 = vld [vmem:[%s4407_s29 + $0x10] ss:$8 sps:$4 sm:$0xff]  }
 0x4c3   : > { %3170 = vmatprep.subr.mxu1 %v3978_v29 }
 0x4c4   : > { %3171 = vmatpush3.msra.mxu1 %v1352_v51  ;;  %v3494_v51 = vld [vmem:[%s4407_s29 + $0x4] ss:$8 sps:$4 sm:$0xff]  }
 0x4c5   : > { %3186 = vmatprep.subr.mxu1 %v3978_v29 }
 0x57d   : > { %v1507_v53 = vpop.f32.mrf.mxu1 }
 0x57e   : > { %3513 = vrcp.f32 %v1507_v53 }
 0x57f   : > { %v3163_v54 = vpop.f32.mrf.mxu1  ;;  %3515 = vpow2.f32 %v1673_v58 }
 0x58b   : > { %v3514_v59 = vpop.eup %3513 }
 0x58c   : > { %v1512_v60 = vmul.f32 %v3514_v59, %v3512_v45  ;;  %v3516_v61 = vpop.eup %3515  ;;  %v3488_v45 = vld [vmem:[%s4407_s29 + $0x24] ss:$8 sps:$4 sm:$0xff]  }
 0x58e   : > { %3173 = vmatmul.mubr.msk.f32.vlgmr.msra.gmra.mxu1 %vm1431_vm1, %v1512_v60 }
 0x58f   : > { %3187 = vmatpush3.msra.mxu1 %v1347_v37  ;;  %3194 = vmatprep.mubr.msk.f32.mxu1 %vm3979_vm0, %v3978_v29  ;;  %v3476_v37 = vld [vmem:[%s4407_s29 + $0x64] ss:$8 sps:$4 sm:$0xff]  }
 0x590   : > { %3188 = vmatprep.subr.mxu1 %v3978_v29 }
 0x591   : > { %3189 = vmatpush3.msra.mxu1 %v1346_v38  ;;  %v3474_v38 = vld [vmem:[%s4407_s29 + $0x60] ss:$8 sps:$4 sm:$0xff]  }
 0x592   : > { %3190 = vmatprep.subr.mxu1 %v3978_v29 }
 0x593   : > { %3191 = vmatpush3.msra.mxu1 %v1345_v39  ;;  %v3479_v39 = vld [vmem:[%s4407_s29 + $0x54] ss:$8 sps:$4 sm:$0xff]  }
 0x594   : > { %3192 = vmatprep.subr.mxu1 %v3978_v29 }
 0x595   : > { %3193 = vmatpush3.msra.mxu1 %v1344_v40  ;;  %v3477_v40 = vld [vmem:[%s4407_s29 + $0x50] ss:$8 sps:$4 sm:$0xff]   ;;  %s4844_s29 = scalar_lea.vmem %s4843_s26, %s4421_s17 }
 0x596   : > { %3195 = vmatmul.mubr.msk.f32.vlgmr.msra.gmra.mxu1 %vm1431_vm1, %v3516_v61  ;;  %3197 = vmatprep.subr.mxu1 %v3978_v29 }
 0x597   : > { %3198 = vmatpush3.msra.mxu1 %v1593_v63  ;;  %3205 = vmatprep.mubr.msk.f32.mxu1 %vm3979_vm0, %v3978_v29 }
 0x598   : > { %3199 = vmatprep.subr.mxu1 %v3978_v29 }
 0x599   : > { %3200 = vmatpush3.msra.mxu1 %v1592_v0  ;;  %v2971_v0 = vld [vmem:[%s4844_s29] ss:$0 sm:$0xff] }
 0x59a   : > { %3201 = vmatprep.subr.mxu1 %v3978_v29 }
 0x59b   : > { %3202 = vmatpush3.msra.mxu1 %v1591_v62 }
 0x59c   : > { %3203 = vmatprep.subr.mxu1 %v3978_v29  ;;  %v2962_v29 = vld [vmem:[%s4842_s13] ss:$0 sm:$0xff] }
 0x59d   : > { %3204 = vmatpush3.msra.mxu1 %v1590_v1 }
 0x59e   : > { %2088 = vmatprep.subr.bf16.mxu1 %v3473_v30 }
 0x64e   : > { %v1582_v10 = vpop.f32.mrf.mxu1 }
 0x650   : > { %v3174_v11 = vpop.f32.mrf.mxu1 }
 0x651   : > { %v3497_v11 = vld [vmem:[%s4409_s11 + $0x70] sm:$0xff]  }
 0x656   : > { %v1744_v12 = vpop.f32.mrf.mxu1 }
 0x657   : > { %3517 = vrcp.f32 %v1744_v12  ;;  %v3498_v12 = vld [vmem:[%s4409_s11 + $0x30] sm:$0xff]  }
 0x658   : > { %v3196_v13 = vpop.f32.mrf.mxu1 }
 0x659   : > { %v3499_v13 = vld [vmem:[%s4409_s11 + $0x68] sm:$0xff]  }
 0x664   : > { %v3518_v14 = vpop.eup %3517 }
 0x665   : > { %v1749_v15 = vmul.f32 %v3518_v14, %v3516_v61  ;;  %v3500_v14 = vld [vmem:[%s4409_s11 + $0x28] sm:$0xff]  }
 0x667   : > { %3206 = vmatmul.mubr.msk.f32.vlgmr.msra.gmra.mxu1 %vm1431_vm1, %v1749_v15  ;;  %v3501_v15 = vld [vmem:[%s4409_s11 + $0x60] sm:$0xff]  }
 0x668   : > { %2120 = vmatprep.mubr.bf16.mxu1 %v3977_v28  ;;  %2089 = vmatpush1.bf16.msra.mxu1 %v3471_v27 }
 0x669   : > { %2090 = vmatprep.subr.bf16.mxu1 %v3476_v37 }
 0x66c   : > { %2091 = vmatpush1.bf16.msra.mxu1 %v3474_v38 }
 0x66d   : > { %2092 = vmatprep.subr.bf16.mxu1 %v3479_v39 }
 0x670   : > { %2093 = vmatpush1.bf16.msra.mxu1 %v3477_v40 }
 0x671   : > { %2094 = vmatprep.subr.bf16.mxu1 %v3482_v42 }
 0x674   : > { %2095 = vmatpush1.bf16.msra.mxu1 %v3480_v41 }
 0x675   : > { %2096 = vmatprep.subr.bf16.mxu1 %v3485_v43 }
 0x678   : > { %2097 = vmatpush1.bf16.msra.mxu1 %v3483_v44 }
 0x679   : > { %2098 = vmatprep.subr.bf16.mxu1 %v3488_v45 }
 0x67c   : > { %2099 = vmatpush1.bf16.msra.mxu1 %v3486_v46 }
 0x67d   : > { %2100 = vmatprep.subr.bf16.mxu1 %v3491_v47 }
 0x680   : > { %2101 = vmatpush1.bf16.msra.mxu1 %v3489_v48 }
 0x681   : > { %2102 = vmatprep.subr.bf16.mxu1 %v3494_v51 }
 0x684   : > { %2103 = vmatpush1.bf16.msra.mxu1 %v3492_v52 }
 0x727   : > { %v1819_v17 = vpop.f32.mrf.mxu1 }
 0x728   : > { %v1839_v18 = vpack.c.bf16 %v1819_v17, %v1582_v10  ;;  %v3496_v10 = vld [vmem:[%s4409_s11 + $0x38] sm:$0xff]  }
 0x729   : > { %v3207_v19 = vpop.f32.mrf.mxu1  ;;  %v3503_v17 = vld [vmem:[%s4409_s11 + $0x58] sm:$0xff]  }
 0x72a   : > { %3225 = vmatmul.mubr.bf16.vlgmr.msra.gmra.mxu0 %v1839_v18  ;;  %v3504_v18 = vld [vmem:[%s4409_s11 + $0x18] sm:$0xff]   ;;  %v3505_v19 = vld [vmem:[%s4409_s11 + $0x50] sm:$0xff]  }
 0x72b   : > { %3083 = vmatpush3.bf16.msra.mxu0 %v3496_v10 }
 0x72c   : > { %3084 = vmatprep.subr.bf16.mxu0 %v3497_v11 }
 0x72f   : > { %3085 = vmatpush3.bf16.msra.mxu0 %v3498_v12 }
 0x730   : > { %3086 = vmatprep.subr.bf16.mxu0 %v3499_v13  ;;  %v2989_v13 = vld [vmem:[%s1019_s8] ss:$0 sm:$0xff] }
 0x733   : > { %3087 = vmatpush3.bf16.msra.mxu0 %v3500_v14 }
 0x734   : > { %3088 = vmatprep.subr.bf16.mxu0 %v3501_v15 }
 0x737   : > { %3089 = vmatpush3.bf16.msra.mxu0 %v3502_v16 }
 0x738   : > { %3090 = vmatprep.subr.bf16.mxu0 %v3503_v17 }
 0x73b   : > { %3091 = vmatpush3.bf16.msra.mxu0 %v3504_v18 }
 0x73c   : > { %3092 = vmatprep.subr.bf16.mxu0 %v3505_v19 }
 0x7ea   : > { %v1929_v20 = vpop.f32.mrf.mxu0 }
 0x7eb   : > { %v1930_v21 = vadd.f32 %v2962_v29, %v1929_v20  ;;  %v3507_v20 = vld [vmem:[%s4409_s11 + $0x48] sm:$0xff]  }
 0x7ec   : > { %v3226_v22 = vpop.f32.mrf.mxu0 }
 0x7ed   : > { %v1936_v23 = vadd.f32 %v1930_v21, %v4487_v49  ;;  %v3508_v21 = vld [vmem:[%s4409_s11 + $0x8] sm:$0xff]   ;;  %v3509_v22 = vld [vmem:[%s4409_s11 + $0x40] sm:$0xff]  }
 0x7ee   : > { %v1932_v24 = vpop.f32.mrf.mxu0 }
 0x7ef   : > { %v1933_v28 = vadd.f32 %v2962_v29, %v1932_v24  ;;  %1940 = vadd.xlane.f32.xlu1 %v1936_v23  ;;  %v3506_v29 = vld [vmem:[%s4409_s11 + $0x10] sm:$0xff]   ;;  %v1996_v24 = vld [vmem:[%s4445_s14] sm:$0x3] }
 0x7f0   : > { %v3227_v25 = vpop.f32.mrf.mxu0  ;;  %3093 = vmatpush3.bf16.msra.mxu0 %v3506_v29 }
 0x7f1   : > { %v1937_v26 = vadd.f32 %v1933_v28, %v4489_v50  ;;  %3094 = vmatprep.subr.bf16.mxu0 %v3507_v20  ;;  %v2001_v28 = vrot.slane %v1996_v24, %v1115_v8  ;;  %v2005_v25 = vrot.slane %v1996_v24, %v1119_v57 }
 0x7f3   : > { %1942 = vadd.xlane.f32.xlu1 %v1937_v26 }
 0x7f4   : > { %3095 = vmatpush3.bf16.msra.mxu0 %v3508_v21 }
 0x7f5   : > { %3096 = vmatprep.subr.bf16.mxu0 %v3509_v22 }
 0x878   : > { %v1941_v31 = vpop.xlane.xlu1 %1940 }
 0x879   : > { %v1945_v32 = vmul.f32 0.0078125, %v1941_v31 }
 0x87b   : > { %v1947_v33 = vsub.f32 %v1936_v23, %v1945_v32  ;;  %v3510_v23 = vld [vmem:[%s4409_s11] sm:$0xff]  }
 0x87c   : > { %v1943_v49 = vpop.xlane.xlu1 %1942  ;;  %3097 = vmatpush3.bf16.msra.mxu0 %v3510_v23 }
 0x87d   : > { %v1946_v34 = vmul.f32 0.0078125, %v1943_v49  ;;  %v1949_v35 = vmul.f32 %v1947_v33, %v1947_v33 }
 0x87f   : > { %v1948_v36 = vsub.f32 %v1937_v26, %v1946_v34  ;;  %1951 = vadd.xlane.f32.xlu0 %v1949_v35 }
 0x881   : > { %v1950_v50 = vmul.f32 %v1948_v36, %v1948_v36 }
 0x883   : > { %1953 = vadd.xlane.f32.xlu1 %v1950_v50 }
 0x908   : > { %v1952_v53 = vpop.xlane.xlu0 %1951 }
 0x909   : > { %v1955_v54 = vmul.f32 0.0078125, %v1952_v53 }
 0x90b   : > { %v1957_v55 = vadd.f32 1e-12, %v1955_v54 }
 0x90c   : > { %v1954_v58 = vpop.xlane.xlu1 %1953 }
 0x90d   : > { %3519 = vrsqrt.f32 %v1957_v55  ;;  %v1956_v59 = vmul.f32 0.0078125, %v1954_v58 }
 0x90f   : > { %v1958_v60 = vadd.f32 1e-12, %v1956_v59 }
 0x911   : > { %3521 = vrsqrt.f32 %v1958_v60 }
 0x91a   : > { %v3520_v61 = vpop.eup %3519 }
 0x91b   : > { %v1961_v63 = vmul.f32 %v3520_v61, %v1947_v33 }
 0x91d   : > { %v1969_v2 = vmul.f32 %v2971_v0, %v1961_v63 }
 0x91e   : > { %v3522_v62 = vpop.eup %3521 }
 0x91f   : > { %v1962_v1 = vmul.f32 %v3522_v62, %v1948_v36  ;;  %v4636_v5 = vadd.f32 %v2972_v3, %v1969_v2 }
 0x921   : > { %v1970_v4 = vmul.f32 %v2971_v0, %v1962_v1 }
 0x923   : > { %v4638_v6 = vadd.f32 %v2972_v3, %v1970_v4 }
 0x925   : > { %v1995_v7 = vpack.c.bf16 %v4638_v6, %v4636_v5 }
 0x927   : > { %2121 = vmatmul.mubr.bf16.vlgmr.msra.gmra.mxu1 %v1995_v7 }
 0x9e7   : > { %v2122_v26 = vpop.f32.mrf.mxu1 }
 0x9e8   : > { %v2123_v27 = vadd.f32 %v2122_v26, %v2001_v28 }
 0x9e9   : > { %v2124_v30 = vpop.f32.mrf.mxu1 }
 0x9ea   : > { %v2131_v31 = vmul.f32 %v2123_v27, %v2123_v27  ;;  %v2125_v32 = vadd.f32 %v2124_v30, %v2005_v25 }
 0x9eb   : > { %v2126_v33 = vpop.f32.mrf.mxu1 }
 0x9ec   : > { %v2135_v49 = vmul.f32 %v2131_v31, %v2123_v27  ;;  %v2132_v34 = vmul.f32 %v2125_v32, %v2125_v32  ;;  %v2127_v35 = vadd.f32 %v2126_v33, %v2001_v28 }
 0x9ed   : > { %v2128_v36 = vpop.f32.mrf.mxu1 }
 0x9ee   : > { %v2139_v50 = vmul.f32 0.044715, %v2135_v49  ;;  %v2136_v37 = vmul.f32 %v2132_v34, %v2125_v32  ;;  %v2133_v38 = vmul.f32 %v2127_v35, %v2127_v35  ;;  %v2129_v39 = vadd.f32 %v2128_v36, %v2005_v25 }
 0x9f0   : > { %v2143_v40 = vadd.f32 %v2139_v50, %v2123_v27  ;;  %v2140_v41 = vmul.f32 0.044715, %v2136_v37  ;;  %v2137_v8 = vmul.f32 %v2133_v38, %v2127_v35  ;;  %v2134_v42 = vmul.f32 %v2129_v39, %v2129_v39  ;;  %v3007_v50 = vld [vmem:[%s1025_s25] ss:$0 sm:$0xff]  ;;  %s4851_s25 = sld [smem:[#allocation50_spill]] (!%p3008_p5) }
 0x9f2   : > { %v2147_v56 = vmul.f32 0.7978846, %v2143_v40  ;;  %v2144_v57 = vadd.f32 %v2140_v41, %v2125_v32  ;;  %v2141_v43 = vmul.f32 0.044715, %v2137_v8  ;;  %v2138_v44 = vmul.f32 %v2134_v42, %v2129_v39 }
 0x9f4   : > { %v2148_v45 = vmul.f32 0.7978846, %v2144_v57  ;;  %v2145_v46 = vadd.f32 %v2141_v43, %v2127_v35  ;;  %v2142_v47 = vmul.f32 0.044715, %v2138_v44  ;;  %3523 = vtanh.f32 %v2147_v56 }
 0x9f6   : > { %3525 = vtanh.f32 %v2148_v45  ;;  %v2149_v48 = vmul.f32 0.7978846, %v2145_v46  ;;  %v2146_v51 = vadd.f32 %v2142_v47, %v2129_v39 }
 0x9f8   : > { %3527 = vtanh.f32 %v2149_v48  ;;  %v2150_v52 = vmul.f32 0.7978846, %v2146_v51 }
 0x9fa   : > { %3529 = vtanh.f32 %v2150_v52 }
 0xa01   : > { %v3524_v53 = vpop.eup %3523 }
 0xa02   : > { %v2155_v59 = vadd.f32 1.0, %v3524_v53 }
 0xa03   : > { %v3526_v54 = vpop.eup %3525 }
 0xa04   : > { %v2156_v55 = vadd.f32 1.0, %v3526_v54  ;;  %v2159_v1 = vmul.f32 0.5, %v2155_v59 }
 0xa05   : > { %v3528_v58 = vpop.eup %3527 }
 0xa06   : > { %v2157_v60 = vadd.f32 1.0, %v3528_v58  ;;  %v2160_v62 = vmul.f32 0.5, %v2156_v55  ;;  %v2163_v9 = vmul.f32 %v2159_v1, %v2123_v27 }
 0xa07   : > { %v3530_v61 = vpop.eup %3529 }
 0xa08   : > { %v2161_v63 = vmul.f32 0.5, %v2157_v60  ;;  %v2158_v0 = vadd.f32 1.0, %v3530_v61  ;;  %v2164_v4 = vmul.f32 %v2160_v62, %v2125_v32 }
 0xa0a   : > { %v2162_v2 = vmul.f32 0.5, %v2158_v0  ;;  %v2165_v3 = vmul.f32 %v2161_v63, %v2127_v35  ;;  %v3006_v35 = vld [vmem:[%s1022_s3] ss:$0 sm:$0xff]  ;;  %s4850_s3 = sld [smem:[#allocation49_spill]] (!%p3008_p5) }
 0xa0c   : > { %v2166_v7 = vmul.f32 %v2162_v2, %v2129_v39  ;;  %v2199_v11 = vpack.c.bf16 %v2165_v3, %v2163_v9 }
 0xa0e   : > { %v2200_v10 = vpack.c.bf16 %v2166_v7, %v2164_v4 }
 0xa10   : > { %2336 = vmatprep.mubr.bf16.mxu0 %v2200_v10 }
 0xa11   : > { %2337 = vmatmul.mubr.bf16.vlgmr.msra.gmra.mxu0 %v2199_v11 }
 0xad1   : > { %v3098_v12 = vpop.f32.mrf.mxu0 }
 0xad3   : > { %v3099_v14 = vpop.f32.mrf.mxu0 }
 0xad4   : > { %v3100_v15 = vadd.f32 %v3099_v14, %v3098_v12 }
 0xad5   : > { %v3101_v16 = vpop.f32.mrf.mxu0 }
 0xad6   : > { %v2339_v17 = vadd.f32 %v3100_v15, %v2989_v13 }
 0xad7   : > { %v3102_v18 = vpop.f32.mrf.mxu0 }
 0xad8   : > { %v3103_v19 = vadd.f32 %v3102_v18, %v3101_v16  ;;  %v2345_v29 = vadd.f32 %v2339_v17, %v4636_v5 }
 0xada   : > { %v2342_v20 = vadd.f32 %v3103_v19, %v2989_v13  ;;  %2349 = vadd.xlane.f32.xlu0 %v2345_v29 }
 0xadc   : > { %v2346_v21 = vadd.f32 %v2342_v20, %v4638_v6 }
 0xade   : > { %2351 = vadd.xlane.f32.xlu1 %v2346_v21 }
 0xb63   : > { %v2350_v22 = vpop.xlane.xlu0 %2349 }
 0xb64   : > { %v2353_v23 = vmul.f32 0.0078125, %v2350_v22 }
 0xb66   : > { %v2355_v24 = vsub.f32 %v2345_v29, %v2353_v23 }
 0xb67   : > { %v2352_v28 = vpop.xlane.xlu1 %2351 }
 0xb68   : > { %v2354_v25 = vmul.f32 0.0078125, %v2352_v28  ;;  %v2357_v26 = vmul.f32 %v2355_v24, %v2355_v24 }
 0xb6a   : > { %v2356_v27 = vsub.f32 %v2346_v21, %v2354_v25  ;;  %2359 = vadd.xlane.f32.xlu0 %v2357_v26 }
 0xb6c   : > { %v2358_v30 = vmul.f32 %v2356_v27, %v2356_v27 }
 0xb6e   : > { %2361 = vadd.xlane.f32.xlu1 %v2358_v30 }
 0xbf3   : > { %v2360_v31 = vpop.xlane.xlu0 %2359 }
 0xbf4   : > { %v2363_v32 = vmul.f32 0.0078125, %v2360_v31 }
 0xbf6   : > { %v2365_v5 = vadd.f32 1e-12, %v2363_v32 }
 0xbf7   : > { %v2362_v33 = vpop.xlane.xlu1 %2361 }
 0xbf8   : > { %3531 = vrsqrt.f32 %v2365_v5  ;;  %v2364_v49 = vmul.f32 0.0078125, %v2362_v33 }
 0xbfa   : > { %v2366_v6 = vadd.f32 1e-12, %v2364_v49 }
 0xbfc   : > { %3533 = vrsqrt.f32 %v2366_v6 }
 0xc05   : > { %v3532_v34 = vpop.eup %3531 }
 0xc06   : > { %v2369_v36 = vmul.f32 %v3532_v34, %v2355_v24 }
 0xc08   : > { %v2377_v37 = vmul.f32 %v3006_v35, %v2369_v36 }
 0xc09   : > { %v3534_v38 = vpop.eup %3533 }
 0xc0a   : > { %v2385_v39 = vadd.f32 %v3007_v50, %v2377_v37  ;;  %v2370_v40 = vmul.f32 %v3534_v38, %v2356_v27 }
 0xc0c   : > { %2387 = vst [vmem:[#allocation2] sm:$0xff] %v2385_v39  ;;  %v2378_v41 = vmul.f32 %v3006_v35, %v2370_v40  ;;  %2392 = sbr.rel (%p3008_p5) target bundleno = 3525 (0xdc5), region = 164 }
 0xc0e   : > { %v2386_v8 = vadd.f32 %v3007_v50, %v2378_v41 }
 0xc10   : > { %2388 = vst [vmem:[#allocation2 + $0x8] sm:$0xff] %v2386_v8 }
 0xc11   : > { %v3535_v42 = vld [vmem:[#allocation18 + $0x38] sm:$0xff]   ;;  %v3980_v56 = vmov 0.0   ;;  %v3536_v57 = vld [vmem:[#allocation18 + $0x30] sm:$0xff]   ;;  %vm3981_vm2 = vmmov 0   ;;  %v3537_v43 = vld [vmem:[#allocation18 + $0x28] sm:$0xff]   ;;  %v2409_v58 = vpack.c.bf16 %v2386_v8, %v2385_v39 }
 0xc12   : > { %3228 = vmatprep.subr.bf16.mxu0 %v3980_v56  ;;  %3248 = vmatprep.subr.bf16.mxu1 %v3980_v56  ;;  %v3543_v44 = vld [vmem:[#allocation19 + $0x38] sm:$0xff]   ;;  %v3538_v45 = vld [vmem:[#allocation18 + $0x20] sm:$0xff]   ;;  %v3544_v46 = vld [vmem:[#allocation19 + $0x30] sm:$0xff]  }
 0xc13   : > { %3229 = vmatpush3.bf16.msra.mxu0 %v3535_v42  ;;  %3244 = vmatprep.mubr.msk.bf16.mxu0 %vm3981_vm2, %v3980_v56  ;;  %v3539_v47 = vld [vmem:[#allocation18 + $0x18] sm:$0xff]   ;;  %v3545_v48 = vld [vmem:[#allocation19 + $0x28] sm:$0xff]   ;;  %v3540_v51 = vld [vmem:[#allocation18 + $0x10] sm:$0xff]  }
 0xc14   : > { %3230 = vmatprep.subr.bf16.mxu0 %v3980_v56  ;;  %3264 = vmatprep.mubr.msk.bf16.mxu1 %vm3981_vm2, %v3980_v56  ;;  %v3546_v52 = vld [vmem:[#allocation19 + $0x20] sm:$0xff]   ;;  %v3541_v53 = vld [vmem:[#allocation18 + $0x8] sm:$0xff]   ;;  %v3547_v54 = vld [vmem:[#allocation19 + $0x18] sm:$0xff]  }
 0xc15   : > { %3249 = vmatpush3.bf16.msra.mxu1 %v3543_v44  ;;  %v3542_v55 = vld [vmem:[#allocation18] sm:$0xff]   ;;  %v3548_v59 = vld [vmem:[#allocation19 + $0x10] sm:$0xff]   ;;  %v3549_v60 = vld [vmem:[#allocation19 + $0x8] sm:$0xff]  }
 0xc16   : > { %3250 = vmatprep.subr.bf16.mxu1 %v3980_v56  ;;  %v3550_v61 = vld [vmem:[#allocation19] sm:$0xff]   ;;  %v3009_v63 = vld [vmem:[%s4850_s3] ss:$0 sm:$0xff] }
 0xc17   : > { %3231 = vmatpush3.bf16.msra.mxu0 %v3536_v57  ;;  %v3018_v11 = vld [vmem:[%s4851_s25] ss:$0 sm:$0xff] }
 0xc18   : > { %3232 = vmatprep.subr.bf16.mxu0 %v3980_v56 }
 0xc19   : > { %3251 = vmatpush3.bf16.msra.mxu1 %v3544_v46 }
 0xc1a   : > { %3252 = vmatprep.subr.bf16.mxu1 %v3980_v56 }
 0xc1b   : > { %3233 = vmatpush3.bf16.msra.mxu0 %v3537_v43 }
 0xc1c   : > { %3234 = vmatprep.subr.bf16.mxu0 %v3980_v56 }
 0xc1d   : > { %3253 = vmatpush3.bf16.msra.mxu1 %v3545_v48 }
 0xc1e   : > { %3254 = vmatprep.subr.bf16.mxu1 %v3980_v56 }
 0xc1f   : > { %3235 = vmatpush3.bf16.msra.mxu0 %v3538_v45 }
 0xc20   : > { %3236 = vmatprep.subr.bf16.mxu0 %v3980_v56 }
 0xc21   : > { %3255 = vmatpush3.bf16.msra.mxu1 %v3546_v52 }
 0xc22   : > { %3256 = vmatprep.subr.bf16.mxu1 %v3980_v56 }
 0xc23   : > { %3237 = vmatpush3.bf16.msra.mxu0 %v3539_v47 }
 0xc24   : > { %3238 = vmatprep.subr.bf16.mxu0 %v3980_v56 }
 0xc25   : > { %3257 = vmatpush3.bf16.msra.mxu1 %v3547_v54 }
 0xc26   : > { %3258 = vmatprep.subr.bf16.mxu1 %v3980_v56 }
 0xc27   : > { %3239 = vmatpush3.bf16.msra.mxu0 %v3540_v51 }
 0xc28   : > { %3240 = vmatprep.subr.bf16.mxu0 %v3980_v56 }
 0xc29   : > { %3259 = vmatpush3.bf16.msra.mxu1 %v3548_v59 }
 0xc2a   : > { %3260 = vmatprep.subr.bf16.mxu1 %v3980_v56 }
 0xc2b   : > { %3241 = vmatpush3.bf16.msra.mxu0 %v3541_v53 }
 0xc2c   : > { %3242 = vmatprep.subr.bf16.mxu0 %v3980_v56 }
 0xc2d   : > { %3261 = vmatpush3.bf16.msra.mxu1 %v3549_v60 }
 0xc2e   : > { %3262 = vmatprep.subr.bf16.mxu1 %v3980_v56 }
 0xc2f   : > { %3243 = vmatpush3.bf16.msra.mxu0 %v3542_v55 }
 0xc31   : > { %3263 = vmatpush3.bf16.msra.mxu1 %v3550_v61 }
 0xc32   : > { %3245 = vmatmul.mubr.bf16.vlgmr.msra.gmra.mxu0 %v2409_v58 }
 0xcf2   : > { %v2499_v0 = vpop.f32.mrf.mxu0 }
 0xcf3   : > { %v2500_v1 = vadd.f32 %v3009_v63, %v2499_v0 }
 0xcf4   : > { %v3246_v62 = vpop.f32.mrf.mxu0 }
 0xcf5   : > { %v2506_v7 = vmax.f32 %v2500_v1, 0.0 }
 0xcf6   : > { %v2502_v2 = vpop.f32.mrf.mxu0 }
 0xcf7   : > { %v2503_v3 = vadd.f32 %v3009_v63, %v2502_v2 }
 0xcf8   : > { %v3247_v4 = vpop.f32.mrf.mxu0 }
 0xcf9   : > { %v2507_v9 = vmax.f32 %v2503_v3, 0.0 }
 0xcfb   : > { %v2524_v10 = vpack.c.bf16 %v2507_v9, %v2506_v7 }
 0xcfd   : > { %3265 = vmatmul.mubr.bf16.vlgmr.msra.gmra.mxu1 %v2524_v10 }
 0xdbd   : > { %v2614_v12 = vpop.f32.mrf.mxu1 }
 0xdbe   : > { %v2615_v13 = vadd.f32 %v3018_v11, %v2614_v12 }
 0xdbf   : > { %v3266_v14 = vpop.f32.mrf.mxu1 }
 0xdc0   : > { %2621 = vst [vmem:[#allocation20] sm:$0xff] %v2615_v13 }
 0xdc1   : > { %v2617_v15 = vpop.f32.mrf.mxu1 }
 0xdc2   : > { %v2618_v16 = vadd.f32 %v3018_v11, %v2617_v15 }
 0xdc3   : > { %v3267_v17 = vpop.f32.mrf.mxu1 }
 0xdc4   : > { %2622 = vst [vmem:[#allocation20 + $0x8] sm:$0xff] %v2618_v16 }
 0xdc5 PF: > { %p3371_p1 = scmp.eq.s32.totalorder %s4121_s23, 1  ;;  %s3982_s12 = smov [#allocation20]  }
 0xdc6   : > { %s2629_s0 = sshll.u32 %s3982_s12, 4  ;;  %s2630_s0 = int_to_ptr.vmem [resolvable:$true] %s2629_s0 }
 0xdc7   : > { %s3871_s13 = scalar_lea.vmem %s2630_s0, 256  ;;  %p3878_p3 = scmp.lt.s32.totalorder %s2630_s0, %s2630_s0 }
 0xdc8   : > { %p3872_p2 = scmp.ne.s32.totalorder %s2630_s0, %s3871_s13  ;;  %p3879_p13 = scmp.lt.s32.totalorder %s3871_s13, %s3871_s13 }
 0xdca   : > { %p3873_p7 = pnand %p3872_p2, %p3371_p1  ;;  %p3880_p6 = por %p3879_p13, %p3878_p3 }
 0xdcc   : > { %p3874_p9 = pneg %p3873_p7 }
 0xdce   : > { %p3881_p11 = pnand %p3880_p6, %p3874_p9 }
 0xdd0   : > { %3884 = shalt.err (!%p3881_p11)
}
 0xdd1   : > { %s3983_s21 = smov 128   ;;  %s3984_s15 = smov 8  }
 0xdd2   : > { %s4852_s4 = sld [smem:[#allocation51_spill]] }
 0xdd8   : > { %3313 = dma.vmem_to_hbm [thread:$0]  (%p3371_p1), %s2630_s0, 256, %s4852_s4, [#allocation5], %s3983_s21, %s3983_s21, %s3984_s15  }
 0xdd9   : > { %3940 = dma.done.wait (%p3371_p1), [#allocation5], 256  }
 0xdda   : > { %3942 = vsyncadd (%p3371_p1), [#allocation5], 4294967040 }
 0xddb PF: > { %s4853_s30 = sld [smem:[#allocation30_spill]]  ;;  %s4856_s3 = smov %s3949_s28 }
 0xddc   : > { %s4854_s19 = sld [smem:[#allocation29_spill]] }
 0xddd   : > { %s4855_s29 = sld [smem:[#allocation31_spill]] }
 0xde1   : > { %p34_p8 = scmp.ge.s32.totalorder %s4853_s30, 4  }
 0xde2   : > { %s4857_s28 = smov %s4854_s19 }
 0xde3   :  { %36 = sbr.rel (!%p34_p8) target bundleno = 27 (0x1b), region = 241 }
 0xde8   :  { %2645 = vsyncpa [#allocation4], 1 }
 0xde9   :  { %2647 = vsyncpa [#allocation4 + $0x1], 1 }
 0xdea   :  { %2648 = vsyncpa [#allocation7], 1 }
 0xdeb   :  { %2649 = vsyncpa [#allocation10], 1 }
 0xdec   :  { %2650 = vsyncpa [#allocation13], 1 }
 0xded   :  { %2651 = vsyncpa [#allocation5], 1 }
 0xdee   :  { %2653 = vsyncpa [#allocation5 + $0x1], 1 }

</bundles_post_ra>
